<compile_context>
chip_gen: v6e
topology: v6e:2x2x1
jax: 0.10.0
libtpu: 0.0.40
codegen_flags: <defaults>
</compile_context>

<pallas_src>
import functools

import jax
import jax.numpy as jnp
from jax.experimental import pallas as pl
from jax.experimental.pallas import tpu as pltpu


def _gaussian_blur_kernel(w_ref, x_ref, o_ref, *, ks, H, W):
    """Separable gaussian blur on a block of reflect-padded images.

    w_ref: (ks,) 1-D gaussian taps in SMEM (sum to 1)
    x_ref: (Bt, H + 2r, W + 2r) reflect-padded images, r = (ks - 1) // 2
    o_ref: (Bt, H, W)
    """
    x = x_ref[...]  # (Bt, Hp, Wp) float32

    # Horizontal pass: (Bt, Hp, W)
    tmp = w_ref[0] * x[:, :, 0:W]
    for j in range(1, ks):
        tmp = tmp + w_ref[j] * x[:, :, j:j + W]

    # Vertical pass: (Bt, H, W)
    out = w_ref[0] * tmp[:, 0:H, :]
    for i in range(1, ks):
        out = out + w_ref[i] * tmp[:, i:i + H, :]

    o_ref[...] = out.astype(o_ref.dtype)


def _gaussian_kernel_1d(kernel_size, sigma):
    """Normalized 1-D gaussian taps (matches get_gaussian_kernel1d for odd ks)."""
    x = jnp.arange(kernel_size, dtype=jnp.float32) - float(kernel_size // 2)
    g = jnp.exp(-(x * x) / (2.0 * sigma * sigma))
    return g / jnp.sum(g)


def _pick_group_size(n_images, hp, wp, target_bytes=2 << 20):
    """Images per grid step: ~2 MiB blocks, divides n, keeps >= 2 grid steps."""
    per_image = hp * wp * 4
    cap = max(1, target_bytes // per_image)
    cap = int(min(cap, max(1, n_images // 2)))
    best = 1
    for d in range(1, cap + 1):
        if n_images % d == 0:
            best = d
    return best


def gaussian_blur_forward(x, sigma):
    """x: (B, C, H, W) float32, sigma: scalar (traced ok). Returns blurred x."""
    B, C, H, W = x.shape
    kernel_size = H // 10
    radius = int(kernel_size // 2)
    ks = 2 * radius + 1

    w1d = _gaussian_kernel_1d(ks, sigma).astype(jnp.float32)

    if radius > 0:
        xp = jnp.pad(
            x, ((0, 0), (0, 0), (radius, radius), (radius, radius)), mode="reflect"
        )
    else:
        xp = x
    Hp, Wp = H + 2 * radius, W + 2 * radius

    n = B * C
    xp = xp.reshape(n, Hp, Wp)
    bt = _pick_group_size(n, Hp, Wp)
    grid = (n // bt,)

    out = pl.pallas_call(
        functools.partial(_gaussian_blur_kernel, ks=ks, H=H, W=W),
        out_shape=jax.ShapeDtypeStruct((n, H, W), x.dtype),
        grid=grid,
        in_specs=[
            pl.BlockSpec(memory_space=pltpu.MemorySpace.SMEM),   # gaussian taps
            pl.BlockSpec((bt, Hp, Wp), lambda i: (i, 0, 0)),     # padded images
        ],
        out_specs=pl.BlockSpec((bt, H, W), lambda i: (i, 0, 0)),
        compiler_params=pltpu.CompilerParams(
            dimension_semantics=("parallel",)),
    )(w1d, xp)
    return out.reshape(B, C, H, W)


if __name__ == "__main__":
    key = jax.random.PRNGKey(0)
    kx, ksig = jax.random.split(key)

    # H=W=64 so kernel_size = 64 // 10 = 6 -> radius 3 -> a real 7x7 blur
    # (H=16 would give a degenerate 1x1 kernel per the module's formula).
    B, C, H, W = 2, 3, 64, 64
    x = jax.random.uniform(kx, (B, C, H, W), dtype=jnp.float32)

    sigma_range = (0.1, 2.0)
    sigma = jax.random.uniform(
        ksig, (), minval=sigma_range[0], maxval=sigma_range[1]
    )

    out = gaussian_blur_forward(x, sigma)
    jax.block_until_ready(out)
    assert out.shape == (B, C, H, W)
    assert bool(jnp.all(jnp.isfinite(out)))

    # Pure-JAX reference: depthwise 2-D correlation of the reflect-padded
    # input with the outer-product gaussian kernel (== filter2d reference).
    radius = (H // 10) // 2
    ksz = 2 * radius + 1
    w1d = _gaussian_kernel_1d(ksz, sigma)
    k2d = jnp.outer(w1d, w1d)
    xp = (
        jnp.pad(x, ((0, 0), (0, 0), (radius, radius), (radius, radius)), mode="reflect")
        if radius > 0 else x
    )
    rhs = jnp.broadcast_to(k2d, (C, 1, ksz, ksz)).astype(jnp.float32)
    ref = jax.lax.conv_general_dilated(
        xp, rhs, window_strides=(1, 1), padding="VALID",
        dimension_numbers=("NCHW", "OIHW", "NCHW"),
        feature_group_count=C, precision=jax.lax.Precision.HIGHEST)
    err = float(jnp.max(jnp.abs(out - ref)))
    assert err < 1e-4, f"max abs error vs reference conv: {err}"

    print("KERNEL_OK")
</pallas_src>

<mosaic_0001>
module attributes {stable_mosaic.version = 11 : i64} {
  func.func @_gaussian_blur_kernel(%arg0: i32, %arg1: memref<7xf32, #tpu.memory_space<smem>>, %arg2: memref<3x70x70xf32, #tpu.memory_space<vmem>>, %arg3: memref<3x64x64xf32, #tpu.memory_space<vmem>>) attributes {dimension_semantics = [#tpu.dimension_semantics<parallel>], iteration_bounds = array<i64: 2>, scalar_prefetch = 0 : i64, scratch_operands = 0 : i64, tpu.core_type = #tpu.core_type<tc>, window_params = [{transform_indices = @transform_0, window_bounds = array<i64: 7>}, {transform_indices = @transform_1, window_bounds = array<i64: 3, 70, 70>}, {transform_indices = @transform_2, window_bounds = array<i64: 3, 64, 64>}]} {
    %c0 = arith.constant 0 : index
    %c0_0 = arith.constant 0 : index
    %c0_1 = arith.constant 0 : index
    %0 = vector.load %arg2[%c0, %c0_0, %c0_1] : memref<3x70x70xf32, #tpu.memory_space<vmem>>, vector<3x70x70xf32>
    %c0_2 = arith.constant 0 : index
    %1 = memref.load %arg1[%c0_2] : memref<7xf32, #tpu.memory_space<smem>>
    %2 = vector.extract_strided_slice %0 {offsets = [0, 0, 0], sizes = [3, 70, 64], strides = [1, 1, 1]} : vector<3x70x70xf32> to vector<3x70x64xf32>
    %3 = vector.broadcast %1 : f32 to vector<3x70x64xf32>
    %4 = arith.mulf %3, %2 : vector<3x70x64xf32>
    %c1 = arith.constant 1 : index
    %5 = memref.load %arg1[%c1] : memref<7xf32, #tpu.memory_space<smem>>
    %6 = vector.extract_strided_slice %0 {offsets = [0, 0, 1], sizes = [3, 70, 64], strides = [1, 1, 1]} : vector<3x70x70xf32> to vector<3x70x64xf32>
    %7 = vector.broadcast %5 : f32 to vector<3x70x64xf32>
    %8 = arith.mulf %7, %6 : vector<3x70x64xf32>
    %9 = arith.addf %4, %8 : vector<3x70x64xf32>
    %c2 = arith.constant 2 : index
    %10 = memref.load %arg1[%c2] : memref<7xf32, #tpu.memory_space<smem>>
    %11 = vector.extract_strided_slice %0 {offsets = [0, 0, 2], sizes = [3, 70, 64], strides = [1, 1, 1]} : vector<3x70x70xf32> to vector<3x70x64xf32>
    %12 = vector.broadcast %10 : f32 to vector<3x70x64xf32>
    %13 = arith.mulf %12, %11 : vector<3x70x64xf32>
    %14 = arith.addf %9, %13 : vector<3x70x64xf32>
    %c3 = arith.constant 3 : index
    %15 = memref.load %arg1[%c3] : memref<7xf32, #tpu.memory_space<smem>>
    %16 = vector.extract_strided_slice %0 {offsets = [0, 0, 3], sizes = [3, 70, 64], strides = [1, 1, 1]} : vector<3x70x70xf32> to vector<3x70x64xf32>
    %17 = vector.broadcast %15 : f32 to vector<3x70x64xf32>
    %18 = arith.mulf %17, %16 : vector<3x70x64xf32>
    %19 = arith.addf %14, %18 : vector<3x70x64xf32>
    %c4 = arith.constant 4 : index
    %20 = memref.load %arg1[%c4] : memref<7xf32, #tpu.memory_space<smem>>
    %21 = vector.extract_strided_slice %0 {offsets = [0, 0, 4], sizes = [3, 70, 64], strides = [1, 1, 1]} : vector<3x70x70xf32> to vector<3x70x64xf32>
    %22 = vector.broadcast %20 : f32 to vector<3x70x64xf32>
    %23 = arith.mulf %22, %21 : vector<3x70x64xf32>
    %24 = arith.addf %19, %23 : vector<3x70x64xf32>
    %c5 = arith.constant 5 : index
    %25 = memref.load %arg1[%c5] : memref<7xf32, #tpu.memory_space<smem>>
    %26 = vector.extract_strided_slice %0 {offsets = [0, 0, 5], sizes = [3, 70, 64], strides = [1, 1, 1]} : vector<3x70x70xf32> to vector<3x70x64xf32>
    %27 = vector.broadcast %25 : f32 to vector<3x70x64xf32>
    %28 = arith.mulf %27, %26 : vector<3x70x64xf32>
    %29 = arith.addf %24, %28 : vector<3x70x64xf32>
    %c6 = arith.constant 6 : index
    %30 = memref.load %arg1[%c6] : memref<7xf32, #tpu.memory_space<smem>>
    %31 = vector.extract_strided_slice %0 {offsets = [0, 0, 6], sizes = [3, 70, 64], strides = [1, 1, 1]} : vector<3x70x70xf32> to vector<3x70x64xf32>
    %32 = vector.broadcast %30 : f32 to vector<3x70x64xf32>
    %33 = arith.mulf %32, %31 : vector<3x70x64xf32>
    %34 = arith.addf %29, %33 : vector<3x70x64xf32>
    %c0_3 = arith.constant 0 : index
    %35 = memref.load %arg1[%c0_3] : memref<7xf32, #tpu.memory_space<smem>>
    %36 = vector.extract_strided_slice %34 {offsets = [0, 0, 0], sizes = [3, 64, 64], strides = [1, 1, 1]} : vector<3x70x64xf32> to vector<3x64x64xf32>
    %37 = vector.broadcast %35 : f32 to vector<3x64x64xf32>
    %38 = arith.mulf %37, %36 : vector<3x64x64xf32>
    %c1_4 = arith.constant 1 : index
    %39 = memref.load %arg1[%c1_4] : memref<7xf32, #tpu.memory_space<smem>>
    %40 = vector.extract_strided_slice %34 {offsets = [0, 1, 0], sizes = [3, 64, 64], strides = [1, 1, 1]} : vector<3x70x64xf32> to vector<3x64x64xf32>
    %41 = vector.broadcast %39 : f32 to vector<3x64x64xf32>
    %42 = arith.mulf %41, %40 : vector<3x64x64xf32>
    %43 = arith.addf %38, %42 : vector<3x64x64xf32>
    %c2_5 = arith.constant 2 : index
    %44 = memref.load %arg1[%c2_5] : memref<7xf32, #tpu.memory_space<smem>>
    %45 = vector.extract_strided_slice %34 {offsets = [0, 2, 0], sizes = [3, 64, 64], strides = [1, 1, 1]} : vector<3x70x64xf32> to vector<3x64x64xf32>
    %46 = vector.broadcast %44 : f32 to vector<3x64x64xf32>
    %47 = arith.mulf %46, %45 : vector<3x64x64xf32>
    %48 = arith.addf %43, %47 : vector<3x64x64xf32>
    %c3_6 = arith.constant 3 : index
    %49 = memref.load %arg1[%c3_6] : memref<7xf32, #tpu.memory_space<smem>>
    %50 = vector.extract_strided_slice %34 {offsets = [0, 3, 0], sizes = [3, 64, 64], strides = [1, 1, 1]} : vector<3x70x64xf32> to vector<3x64x64xf32>
    %51 = vector.broadcast %49 : f32 to vector<3x64x64xf32>
    %52 = arith.mulf %51, %50 : vector<3x64x64xf32>
    %53 = arith.addf %48, %52 : vector<3x64x64xf32>
    %c4_7 = arith.constant 4 : index
    %54 = memref.load %arg1[%c4_7] : memref<7xf32, #tpu.memory_space<smem>>
    %55 = vector.extract_strided_slice %34 {offsets = [0, 4, 0], sizes = [3, 64, 64], strides = [1, 1, 1]} : vector<3x70x64xf32> to vector<3x64x64xf32>
    %56 = vector.broadcast %54 : f32 to vector<3x64x64xf32>
    %57 = arith.mulf %56, %55 : vector<3x64x64xf32>
    %58 = arith.addf %53, %57 : vector<3x64x64xf32>
    %c5_8 = arith.constant 5 : index
    %59 = memref.load %arg1[%c5_8] : memref<7xf32, #tpu.memory_space<smem>>
    %60 = vector.extract_strided_slice %34 {offsets = [0, 5, 0], sizes = [3, 64, 64], strides = [1, 1, 1]} : vector<3x70x64xf32> to vector<3x64x64xf32>
    %61 = vector.broadcast %59 : f32 to vector<3x64x64xf32>
    %62 = arith.mulf %61, %60 : vector<3x64x64xf32>
    %63 = arith.addf %58, %62 : vector<3x64x64xf32>
    %c6_9 = arith.constant 6 : index
    %64 = memref.load %arg1[%c6_9] : memref<7xf32, #tpu.memory_space<smem>>
    %65 = vector.extract_strided_slice %34 {offsets = [0, 6, 0], sizes = [3, 64, 64], strides = [1, 1, 1]} : vector<3x70x64xf32> to vector<3x64x64xf32>
    %66 = vector.broadcast %64 : f32 to vector<3x64x64xf32>
    %67 = arith.mulf %66, %65 : vector<3x64x64xf32>
    %68 = arith.addf %63, %67 : vector<3x64x64xf32>
    %c0_10 = arith.constant 0 : index
    %c0_11 = arith.constant 0 : index
    %c0_12 = arith.constant 0 : index
    %69 = vector.load %arg3[%c0_10, %c0_11, %c0_12] : memref<3x64x64xf32, #tpu.memory_space<vmem>>, vector<3x64x64xf32>
    tpu.vector_store %arg3[%c0_10, %c0_11, %c0_12], %68 {strides = array<i32>} : memref<3x64x64xf32, #tpu.memory_space<vmem>>, vector<3x64x64xf32>,
    return
  }
  func.func @transform_0(%arg0: i32) -> i32 {
    %c0_i32 = arith.constant 0 : i32
    %c0_i32_0 = arith.constant 0 : i32
    return %c0_i32 : i32
  }
  func.func @transform_1(%arg0: i32) -> (i32, i32, i32) {
    %c0_i32 = arith.constant 0 : i32
    %c0_i32_0 = arith.constant 0 : i32
    %c0_i32_1 = arith.constant 0 : i32
    return %arg0, %c0_i32, %c0_i32_0 : i32, i32, i32
  }
  func.func @transform_2(%arg0: i32) -> (i32, i32, i32) {
    %c0_i32 = arith.constant 0 : i32
    %c0_i32_0 = arith.constant 0 : i32
    %c0_i32_1 = arith.constant 0 : i32
    return %arg0, %c0_i32, %c0_i32_0 : i32, i32, i32
  }
}

</mosaic_0001>

<bundles_post_ra>
// kernel: tpu_custom_call.1
= control target key start
LH: loop header
LB: loop body
LE: loop exit
PB: predicated region body
PF: predicated region fallthrough
CT: control target
= control target key end

     0   :  { %7 = vsyncpa [#allocation5], 0  ;;  %s4684_s0 = inlined_call_operand.hbm [shape: f32[7], index: 0, kind: input, shape index: {}]   ;;  %s4685_s1 = inlined_call_operand.hbm [shape: f32[6,70,70], index: 1, kind: input, shape index: {}]   ;;  %s4686_s2 = inlined_call_operand.hbm [shape: f32[6,64,64], index: 2, kind: output, shape index: {}]  }
   0x1   :  { %8 = vsyncpa [#allocation3], 0 }
   0x2   :  { %10 = vsyncpa [#allocation3 + $0x1], 0 }
   0x3   :  { %11 = vsyncpa [#allocation4], 0 }
   0x4   :  { %13 = vsyncpa [#allocation4 + $0x1], 0  ;;  %s2529_s9 = smov 0   ;;  %s2531_s10 = smov 0  }
   0x5   :  { %s2533_s11 = smov 0   ;;  %s2535_s12 = smov 0  }
   0x6 LB: > { %s2550_s13 = sadd.s32 4294967295, %s2499_s12   ;;  %s2290_s14 = sadd.s32 4294967294, %s2499_s12   ;;  %s2499_s12 = sphi %s2535_s12, %s4875_s12   ;;  %s2495_s11 = sphi %s2533_s11, %s4874_s11   ;;  %s2491_s10 = sphi %s2531_s10, %s4873_s10   ;;  %s2487_s9 = sphi %s2529_s9, %s4872_s9  }
   0x7   : > { %s2554_s15 = sadd.s32 1, %s2499_s12   ;;  %s47_s16 = sadd.s32 1, %s2495_s11 }
   0x8   : > { %s44_s17 = ssub.s32 %s2499_s12, %s2554_s15  ;;  %p54_p0 = scmp.ne.s32.totalorder %s2495_s11, %s2491_s10 }
   0x9   : > { %p45_p1 = scmp.eq.s32.totalorder %s44_s17, 0  ;;  %p55_p2 = scmp.eq.s32.totalorder %s2499_s12, 0 }
   0xa   : > { %p60_p3 = scmp.ne.s32.totalorder %s2491_s10, %s2487_s9  ;;  %p4687_p4 = scmp.eq.s32.totalorder %s2550_s13, 0 }
   0xb   : > { %s2566_s18 = scalar_select %p45_p1, %s2495_s11, %s47_s16  }
   0xc   : > { %p2568_p5 = por %p55_p2, %p54_p0  ;;  %p2574_p6 = por %p4687_p4, %p60_p3 }
   0xd   : > { %p84_p7 = scmp.eq.s32.totalorder %s2550_s13, 1  ;;  %p90_p8 = scmp.eq.s32.totalorder %s2290_s14, 1 }
   0xe   : > { %s4709_s19 = scalar_select %p2568_p5, 1, 0 }
   0xf   : > { %s4710_s20 = scalar_select %p2574_p6, 1, 0 }
  0x10   : > { %p2291_p9 = scmp.ge.s32.totalorder %s2499_s12, 1  ;;  %p97_p10 = scmp.lt.s32.totalorder %s2499_s12, 3 }
  0x11   : > { %p2581_p11 = por %p84_p7, %p54_p0  ;;  %p2585_p12 = por %p90_p8, %p60_p3 }
  0x12   : > { %p2589_p13 = pnand %p2291_p9, %p97_p10  ;;  %p2335_p4 = scmp.lt.s32.totalorder %s2499_s12, 2 }
  0x13   : > { %s4711_s21 = scalar_select %p2581_p11, 1, 0 }
  0x14   : > { %s4712_s22 = scalar_select %p2585_p12, 1, 0 }
  0x15   : > { %s4713_s23 = scalar_select %p2589_p13, 1, 0 }
  0x16   : > { %p2322_p2 = pneg %p2589_p13  ;;  %s119_s24 = sand.u32 1, %s2495_s11  }
  0x17   : > { %p4714_p6 = scmp.eq.s32.totalorder %s2550_s13, 0  ;;  %p4715_p0 = scmp.ne.s32.totalorder %s4709_s19, 0 }
  0x18   : > { %s2310_s26 = smul.u32 216, %s119_s24  ;;  %s2501_s27 = smov [#allocation2]  }
  0x19   : > { %p2323_p5 = pnand %p2322_p2, %p4714_p6  ;;  %p2602_p7 = pnand %p2335_p4, %p4715_p0 }
  0x1a   : > { %s2336_s30 = smul.u32 3456, %s2499_s12  ;;  %s123_s3 = scalar_lea.vmem [#allocation6], %s2310_s26 }
  0x1b   : > { %2325 = dma.hbm_to_smem (!%p2323_p5), %s4684_s0, 16, %s2501_s27, [#allocation5]  }
  0x1c   : > { %s131_s4 = sshll.u32 %s123_s3, 4  ;;  %s2613_s7 = scalar_lea.hbm %s4685_s1, %s2336_s30  ;;  %s2615_s4 = int_to_ptr.vmem [resolvable:$true] %s131_s4 }
  0x1d   : > { %s2617_s8 = scalar_lea.sflag [#allocation3], %s119_s24  ;;  %s2403_s14 = scalar_lea.hbm %s2613_s7, 3456 }
  0x1e   : > { %p2404_p3 = scmp.ne.s32.totalorder %s2613_s7, %s2403_s14  ;;  %p2405_p4 = pneg %p2602_p7 }
  0x1f   : > { %s2408_s19 = scalar_lea.hbm %s4685_s1, 6912  ;;  %p2409_p8 = scmp.lt.s32.totalorder %s2613_s7, %s4685_s1 }
  0x20   : > { %p2406_p5 = pnand %p2405_p4, %p2404_p3  ;;  %p2410_p9 = scmp.lt.s32.totalorder %s2408_s19, %s2403_s14 }
  0x22   : > { %p2407_p6 = pneg %p2406_p5  ;;  %p2411_p10 = por %p2410_p9, %p2409_p8 }
  0x24   : > { %p2412_p2 = pnand %p2411_p10, %p2407_p6 }
  0x26   : > { %2415 = shalt.err (!%p2412_p2)
}
  0x27   : > { %s2416_s24 = scalar_lea.vmem %s2615_s4, 3456  ;;  %s2502_s28 = smov [#allocation6]  }
  0x28   : > { %p2417_p0 = scmp.ne.s32.totalorder %s2615_s4, %s2416_s24  ;;  %s2421_s29 = sshll.u32 %s2502_s28, 4  ;;  %s2422_s29 = int_to_ptr.vmem [resolvable:$false] %s2421_s29 }
  0x29   : > { %s2423_s30 = scalar_lea.vmem %s2422_s29, 6912  ;;  %p2424_p5 = scmp.lt.s32.totalorder %s2615_s4, %s2422_s29 }
  0x2a   : > { %p2419_p1 = pnand %p2417_p0, %p2405_p4  ;;  %p2425_p12 = scmp.lt.s32.totalorder %s2423_s30, %s2416_s24 }
  0x2c   : > { %p2420_p3 = pneg %p2419_p1  ;;  %p2426_p11 = por %p2425_p12, %p2424_p5 }
  0x2e   : > { %p2427_p13 = pnand %p2426_p11, %p2420_p3 }
  0x30   : > { %2430 = shalt.err (!%p2427_p13)
}
  0x31   : > { %s2503_s3 = smov 128   ;;  %s2504_s5 = smov 8  }
  0x32   : > { %2329 = dma.hbm_to_vmem [thread:$0]  (!%p2602_p7), %s2613_s7, 3456, %s2615_s4, %s2617_s8, %s2503_s3, %s2503_s3, %s2504_s5  }
  0x33   : > { %p4717_p4 = scmp.ne.s32.totalorder %s4713_s23, 0 }
  0x35   : > { %143 = sbr.rel (%p4717_p4) target bundleno = 651 (0x28b), region = 28 }
  0x3a   : > { %p4718_p1 = scmp.eq.s32.totalorder %s2550_s13, 0 }
  0x3c   : > { %2474 = dma.done.wait (%p4718_p1), [#allocation5], 16   ;;  %p4719_p6 = pmov %p4718_p1 }
  0x3d   : > { %s2645_s6 = sand.u32 1, %s2491_s10   ;;  %p4720_p11 = scmp.ne.s32.totalorder %s4710_s20, 0 }
  0x3e   : > { %2476 = vsyncadd (%p4719_p6), [#allocation5], 4294967280  ;;  %s2312_s14 = smul.u32 216, %s2645_s6  ;;  %s150_s16 = scalar_lea.sflag [#allocation3], %s2645_s6 }
  0x40   : > { %s2649_s17 = scalar_lea.vmem [#allocation6], %s2312_s14 }
  0x41   : > { %2478 = dma.done.wait (%p4720_p11), %s150_s16, 3456  }
  0x42   : > { %2480 = vsyncadd (%p4720_p11), %s150_s16, 4294963840 }
  0x43   : > { %158 = sfence }
  0x44   : > { %s2297_s23 = sld [smem:[#allocation2 + $0x1]]  ;;  %v2656_v0 = vld [vmem:[%s2649_s17 + $0x10] sm:$0xff]  ;;  %v2659_v1 = vld [vmem:[%s2649_s17] sm:$0xff]  ;;  %v2664_v3 = vld [vmem:[%s2649_s17 + $0x18] sm:$0xff]  ;;  %s2505_s20 = smov 127   ;;  %vm1295_vm0 = vcmask 1046528  }
  0x45   : > { %v2667_v4 = vld [vmem:[%s2649_s17 + $0x8] sm:$0xff]  ;;  %v2683_v10 = vld [vmem:[%s2649_s17 + $0x20] sm:$0xff]  ;;  %v2692_v13 = vld [vmem:[%s2649_s17 + $0x38] sm:$0xff]  ;;  %s2298_s25 = sld [smem:[#allocation2 + $0x2]]  ;;  %s2506_s4 = smov 126   ;;  %vm1449_vm1 = vcmask 1045504  }
  0x46   : > { %v2680_v9 = vld [vmem:[%s2649_s17 + $0x28] sm:$0xff]  ;;  %v2695_v14 = vld [vmem:[%s2649_s17 + $0x30] sm:$0xff]  ;;  %v2707_v18 = vld [vmem:[%s2649_s17 + $0x40] sm:$0x3f]  ;;  %s2299_s7 = sld [smem:[#allocation2 + $0x3]]  ;;  %s2507_s8 = smov 125  }
  0x47   : > { %v2704_v17 = vld [vmem:[%s2649_s17 + $0x48] sm:$0xff]  ;;  %v2716_v21 = vld [vmem:[%s2649_s17 + $0x58] sm:$0xff]  ;;  %v2719_v22 = vld [vmem:[%s2649_s17 + $0x50] sm:$0xff]  ;;  %s2300_s19 = sld [smem:[#allocation2 + $0x4]]  ;;  %s2508_s26 = smov 124   ;;  %vm1603_vm2 = vcmask 1044480  }
  0x48   : > { %v2728_v25 = vld [vmem:[%s2649_s17 + $0x68] sm:$0xff]  ;;  %v2731_v26 = vld [vmem:[%s2649_s17 + $0x60] sm:$0xff]  ;;  %v2740_v29 = vld [vmem:[%s2649_s17 + $0x78] sm:$0xff]  ;;  %s2301_s27 = sld [smem:[#allocation2 + $0x5]]  ;;  %s2509_s24 = smov 123   ;;  %vm1757_vm3 = vcmask 1043456  }
  0x49   : > { %v2743_v30 = vld [vmem:[%s2649_s17 + $0x70] sm:$0xff]  ;;  %v2752_v33 = vld [vmem:[%s2649_s17 + $0x88] sm:$0x3f]  ;;  %v2755_v34 = vld [vmem:[%s2649_s17 + $0x80] sm:$0xff]  ;;  %s2302_s28 = sld [smem:[#allocation2 + $0x6]]  ;;  %s2510_s29 = smov 122  }
  0x4a   : > { %v2661_v2 = vstv %s2297_s23  ;;  %v2764_v37 = vld [vmem:[%s2649_s17 + $0x98] sm:$0xff]  ;;  %v2767_v38 = vld [vmem:[%s2649_s17 + $0x90] sm:$0xff]  ;;  %v2776_v41 = vld [vmem:[%s2649_s17 + $0xa8] sm:$0xff]  ;;  %s204_s30 = sld [smem:[#allocation2]]  ;;  %vm1911_vm4 = vcmask 1042432   ;;  %vm2065_vm5 = vcmask 1041408  }
  0x4b   : > { %4721 = vst [vmem:[#allocation11_spill] sm:$0xff] %v2661_v2  ;;  %v237_v5 = vmul.f32 %v2661_v2, %v2656_v0  ;;  %v235_v6 = vmul.f32 %v2661_v2, %v2659_v1  ;;  %v238_v7 = vmul.f32 %v2661_v2, %v2664_v3  ;;  %v236_v8 = vmul.f32 %v2661_v2, %v2667_v4  ;;  %v2779_v42 = vld [vmem:[%s2649_s17 + $0xa0] sm:$0xff]  ;;  %v2788_v45 = vld [vmem:[%s2649_s17 + $0xb8] sm:$0xff]  ;;  %v2791_v46 = vld [vmem:[%s2649_s17 + $0xb0] sm:$0xff]  ;;  %s2313_s3 = smul.u32 192, %s2645_s6  ;;  %p4869_p13 = scmp.ne.s32.totalorder %s4711_s21, 0 }
  0x4c   : > { %v240_v11 = vmul.f32 %v2661_v2, %v2680_v9  ;;  %v239_v12 = vmul.f32 %v2661_v2, %v2683_v10  ;;  %v242_v15 = vmul.f32 %v2661_v2, %v2692_v13  ;;  %v241_v16 = vmul.f32 %v2661_v2, %v2695_v14  ;;  %4722 = vst [vmem:[#allocation12_spill] sm:$0xff] %v2788_v45  ;;  %v2800_v49 = vld [vmem:[%s2649_s17 + $0xc8] sm:$0xff]  ;;  %v2803_v50 = vld [vmem:[%s2649_s17 + $0xc0] sm:$0xff]  ;;  %v2814_v54 = vld [vmem:[%s2649_s17 + $0xd0] sm:$0x3f]  ;;  %s2309_s14 = smul.u32 3072, %s2550_s13 }
  0x4d   : > { %293 = vrot.lane.b32.xlu1 %v237_v5, %s2505_s20  ;;  %289 = vrot.lane.b32.xlu0 %v235_v6, %s2505_s20  ;;  %v244_v19 = vmul.f32 %v2661_v2, %v2704_v17  ;;  %v243_v20 = vmul.f32 %v2661_v2, %v2707_v18  ;;  %v246_v23 = vmul.f32 %v2661_v2, %v2716_v21  ;;  %v2811_v53 = vstv %s2298_s25  ;;  %s3792_s5 = scalar_lea.vmem [#allocation7], %s2313_s3  ;;  %s2191_s13 = scalar_lea.sflag [#allocation4], %s2645_s6 }
  0x4e   : > { %v245_v24 = vmul.f32 %v2661_v2, %v2719_v22  ;;  %v248_v27 = vmul.f32 %v2661_v2, %v2728_v25  ;;  %v247_v28 = vmul.f32 %v2661_v2, %v2731_v26  ;;  %v250_v31 = vmul.f32 %v2661_v2, %v2740_v29  ;;  %4723 = vst [vmem:[#allocation13_spill] sm:$0xff] %v2800_v49  ;;  %s2205_s16 = sshll.u32 %s3792_s5, 4  ;;  %s4637_s16 = int_to_ptr.vmem [resolvable:$true] %s2205_s16 }
  0x4f   : > { %v249_v32 = vmul.f32 %v2661_v2, %v2743_v30  ;;  %v252_v35 = vmul.f32 %v2661_v2, %v2752_v33  ;;  %v251_v36 = vmul.f32 %v2661_v2, %v2755_v34  ;;  %v254_v39 = vmul.f32 %v2661_v2, %v2764_v37  ;;  %4724 = vst [vmem:[#allocation14_spill] sm:$0xff] %v2811_v53  ;;  %s2431_s25 = scalar_lea.vmem %s4637_s16, 3072 }
  0x50   : > { %v253_v40 = vmul.f32 %v2661_v2, %v2767_v38  ;;  %v256_v43 = vmul.f32 %v2661_v2, %v2776_v41  ;;  %v255_v44 = vmul.f32 %v2661_v2, %v2779_v42  ;;  %v258_v47 = vmul.f32 %v2661_v2, %v2788_v45  ;;  %p2432_p12 = scmp.ne.s32.totalorder %s4637_s16, %s2431_s25 }
  0x51   : > { %295 = vrot.lane.b32.xlu1 %v238_v7, %s2505_s20  ;;  %291 = vrot.lane.b32.xlu0 %v236_v8, %s2505_s20  ;;  %v257_v48 = vmul.f32 %v2661_v2, %v2791_v46  ;;  %v260_v51 = vmul.f32 %v2661_v2, %v2800_v49  ;;  %v259_v52 = vmul.f32 %v2661_v2, %v2803_v50  ;;  %vm2165_vm6 = vcmask 523264  }
  0x52   : > { %v399_v55 = vmul.f32 %v2811_v53, %v2659_v1  ;;  %v261_v56 = vmul.f32 %v2661_v2, %v2814_v54  ;;  %v401_v57 = vmul.f32 %v2811_v53, %v2656_v0  ;;  %v400_v58 = vmul.f32 %v2811_v53, %v2667_v4  ;;  %p2433_p7 = pnand %p2432_p12, %p4869_p13 }
  0x53   : > { %v403_v59 = vmul.f32 %v2811_v53, %v2683_v10  ;;  %v402_v60 = vmul.f32 %v2811_v53, %v2664_v3  ;;  %v405_v61 = vmul.f32 %v2811_v53, %v2695_v14  ;;  %v404_v62 = vmul.f32 %v2811_v53, %v2680_v9 }
  0x54   : > { %v407_v63 = vmul.f32 %v2811_v53, %v2707_v18  ;;  %v406_v5 = vmul.f32 %v2811_v53, %v2692_v13  ;;  %v409_v6 = vmul.f32 %v2811_v53, %v2719_v22  ;;  %v408_v7 = vmul.f32 %v2811_v53, %v2704_v17  ;;  %p2434_p8 = pneg %p2433_p7 }
  0x55   : > { %299 = vrot.lane.b32.xlu1 %v240_v11, %s2505_s20  ;;  %297 = vrot.lane.b32.xlu0 %v239_v12, %s2505_s20  ;;  %v411_v8 = vmul.f32 %v2811_v53, %v2731_v26  ;;  %v410_v11 = vmul.f32 %v2811_v53, %v2716_v21  ;;  %v413_v12 = vmul.f32 %v2811_v53, %v2743_v30 }
  0x59   : > { %303 = vrot.lane.b32.xlu1 %v242_v15, %s2505_s20  ;;  %301 = vrot.lane.b32.xlu0 %v241_v16, %s2505_s20  ;;  %v412_v15 = vmul.f32 %v2811_v53, %v2728_v25  ;;  %v415_v16 = vmul.f32 %v2811_v53, %v2755_v34 }
  0x5d   : > { %307 = vrot.lane.b32.xlu1 %v244_v19, %s2505_s20  ;;  %305 = vrot.lane.b32.xlu0 %v243_v20, %s2505_s20  ;;  %v414_v19 = vmul.f32 %v2811_v53, %v2740_v29  ;;  %v417_v20 = vmul.f32 %v2811_v53, %v2767_v38 }
  0x61   : > { %311 = vrot.lane.b32.xlu1 %v246_v23, %s2505_s20  ;;  %309 = vrot.lane.b32.xlu0 %v245_v24, %s2505_s20  ;;  %v416_v23 = vmul.f32 %v2811_v53, %v2752_v33  ;;  %v419_v24 = vmul.f32 %v2811_v53, %v2779_v42 }
  0x65   : > { %315 = vrot.lane.b32.xlu1 %v248_v27, %s2505_s20  ;;  %313 = vrot.lane.b32.xlu0 %v247_v28, %s2505_s20  ;;  %v418_v27 = vmul.f32 %v2811_v53, %v2764_v37  ;;  %v421_v28 = vmul.f32 %v2811_v53, %v2791_v46 }
  0x69   : > { %319 = vrot.lane.b32.xlu1 %v250_v31, %s2505_s20  ;;  %317 = vrot.lane.b32.xlu0 %v249_v32, %s2505_s20  ;;  %v420_v31 = vmul.f32 %v2811_v53, %v2776_v41  ;;  %v423_v32 = vmul.f32 %v2811_v53, %v2803_v50 }
  0x6d   : > { %323 = vrot.lane.b32.xlu1 %v252_v35, %s2505_s20  ;;  %321 = vrot.lane.b32.xlu0 %v251_v36, %s2505_s20  ;;  %v422_v35 = vmul.f32 %v2811_v53, %v2788_v45  ;;  %v425_v36 = vmul.f32 %v2811_v53, %v2814_v54 }
  0x71   : > { %327 = vrot.lane.b32.xlu1 %v254_v39, %s2505_s20  ;;  %325 = vrot.lane.b32.xlu0 %v253_v40, %s2505_s20  ;;  %v424_v39 = vmul.f32 %v2811_v53, %v2800_v49  ;;  %v2900_v40 = vstv %s2299_s7 }
  0x72   : > { %4725 = vst [vmem:[#allocation15_spill] sm:$0xff] %v2900_v40 }
  0x75   : > { %331 = vrot.lane.b32.xlu1 %v256_v43, %s2505_s20  ;;  %329 = vrot.lane.b32.xlu0 %v255_v44, %s2505_s20  ;;  %v564_v43 = vmul.f32 %v2900_v40, %v2667_v4  ;;  %v563_v44 = vmul.f32 %v2900_v40, %v2659_v1 }
  0x79   : > { %335 = vrot.lane.b32.xlu1 %v258_v47, %s2505_s20  ;;  %333 = vrot.lane.b32.xlu0 %v257_v48, %s2505_s20  ;;  %v566_v47 = vmul.f32 %v2900_v40, %v2664_v3  ;;  %v565_v48 = vmul.f32 %v2900_v40, %v2656_v0 }
  0x7d   : > { %339 = vrot.lane.b32.xlu1 %v260_v51, %s2505_s20  ;;  %337 = vrot.lane.b32.xlu0 %v259_v52, %s2505_s20  ;;  %v568_v51 = vmul.f32 %v2900_v40, %v2680_v9  ;;  %v567_v52 = vmul.f32 %v2900_v40, %v2683_v10 }
  0x81   : > { %453 = vrot.lane.b32.xlu1 %v399_v55, %s2506_s4  ;;  %341 = vrot.lane.b32.xlu0 %v261_v56, %s2505_s20  ;;  %s4635_s20 = scalar_lea.hbm %s4686_s2, %s2309_s14 }
  0x85   : > { %457 = vrot.lane.b32.xlu1 %v401_v57, %s2506_s4  ;;  %455 = vrot.lane.b32.xlu0 %v400_v58, %s2506_s4  ;;  %v570_v57 = vmul.f32 %v2900_v40, %v2692_v13  ;;  %v569_v58 = vmul.f32 %v2900_v40, %v2695_v14 }
  0x89   : > { %461 = vrot.lane.b32.xlu1 %v403_v59, %s2506_s4  ;;  %459 = vrot.lane.b32.xlu0 %v402_v60, %s2506_s4 }
  0x8d   : > { %465 = vrot.lane.b32.xlu1 %v405_v61, %s2506_s4  ;;  %463 = vrot.lane.b32.xlu0 %v404_v62, %s2506_s4  ;;  %v572_v61 = vmul.f32 %v2900_v40, %v2704_v17  ;;  %v571_v62 = vmul.f32 %v2900_v40, %v2707_v18 }
  0x91   : > { %469 = vrot.lane.b32.xlu1 %v407_v63, %s2506_s4  ;;  %467 = vrot.lane.b32.xlu0 %v406_v5, %s2506_s4 }
  0x95   : > { %473 = vrot.lane.b32.xlu1 %v409_v6, %s2506_s4  ;;  %471 = vrot.lane.b32.xlu0 %v408_v7, %s2506_s4  ;;  %v574_v6 = vmul.f32 %v2900_v40, %v2716_v21  ;;  %v573_v7 = vmul.f32 %v2900_v40, %v2719_v22 }
  0x99   : > { %477 = vrot.lane.b32.xlu1 %v411_v8, %s2506_s4  ;;  %475 = vrot.lane.b32.xlu0 %v410_v11, %s2506_s4 }
  0x9d   : > { %481 = vrot.lane.b32.xlu1 %v413_v12, %s2506_s4  ;;  %479 = vrot.lane.b32.xlu0 %v412_v15, %s2506_s4  ;;  %v576_v12 = vmul.f32 %v2900_v40, %v2728_v25  ;;  %v575_v15 = vmul.f32 %v2900_v40, %v2731_v26 }
  0xa1   : > { %485 = vrot.lane.b32.xlu1 %v415_v16, %s2506_s4  ;;  %483 = vrot.lane.b32.xlu0 %v414_v19, %s2506_s4 }
  0xa5   : > { %489 = vrot.lane.b32.xlu1 %v417_v20, %s2506_s4  ;;  %487 = vrot.lane.b32.xlu0 %v416_v23, %s2506_s4  ;;  %v578_v20 = vmul.f32 %v2900_v40, %v2740_v29  ;;  %v577_v23 = vmul.f32 %v2900_v40, %v2743_v30 }
  0xa9   : > { %493 = vrot.lane.b32.xlu1 %v419_v24, %s2506_s4  ;;  %491 = vrot.lane.b32.xlu0 %v418_v27, %s2506_s4 }
  0xad   : > { %497 = vrot.lane.b32.xlu1 %v421_v28, %s2506_s4  ;;  %495 = vrot.lane.b32.xlu0 %v420_v31, %s2506_s4  ;;  %v580_v28 = vmul.f32 %v2900_v40, %v2752_v33  ;;  %v579_v31 = vmul.f32 %v2900_v40, %v2755_v34 }
  0xb1   : > { %501 = vrot.lane.b32.xlu1 %v423_v32, %s2506_s4  ;;  %499 = vrot.lane.b32.xlu0 %v422_v35, %s2506_s4 }
  0xb5   : > { %505 = vrot.lane.b32.xlu1 %v425_v36, %s2506_s4  ;;  %503 = vrot.lane.b32.xlu0 %v424_v39, %s2506_s4  ;;  %v582_v36 = vmul.f32 %v2900_v40, %v2764_v37  ;;  %v581_v39 = vmul.f32 %v2900_v40, %v2767_v38  ;;  %s2511_s4 = smov [#allocation7]  }
  0xb6   : > { %s2435_s7 = sshll.u32 %s2511_s4, 4  ;;  %s2436_s7 = int_to_ptr.vmem [resolvable:$false] %s2435_s7 }
  0xb7   : > { %p2438_p9 = scmp.lt.s32.totalorder %s4637_s16, %s2436_s7 }
  0xb9   : > { %619 = vrot.lane.b32.xlu1 %v564_v43, %s2507_s8  ;;  %617 = vrot.lane.b32.xlu0 %v563_v44, %s2507_s8 }
  0xbd   : > { %623 = vrot.lane.b32.xlu1 %v566_v47, %s2507_s8  ;;  %621 = vrot.lane.b32.xlu0 %v565_v48, %s2507_s8  ;;  %v584_v47 = vmul.f32 %v2900_v40, %v2776_v41  ;;  %v583_v48 = vmul.f32 %v2900_v40, %v2779_v42 }
  0xbf   : > { %v2920_v55 = vpop.permute.xlu1 %293  ;;  %v2922_v56 = vpop.permute.xlu0 %289 }
  0xc0   : > { %4726 = vst [vmem:[#allocation16_spill] sm:$0xff] %v2920_v55  ;;  %4727 = vst [vmem:[#allocation17_spill] sm:$0xff] %v2922_v56 }
  0xc1   : > { %627 = vrot.lane.b32.xlu1 %v568_v51, %s2507_s8  ;;  %625 = vrot.lane.b32.xlu0 %v567_v52, %s2507_s8 }
  0xc3   : > { %v2930_v59 = vpop.permute.xlu1 %295  ;;  %v2932_v60 = vpop.permute.xlu0 %291 }
  0xc4   : > { %4728 = vst [vmem:[#allocation18_spill] sm:$0xff] %v2930_v59  ;;  %4729 = vst [vmem:[#allocation19_spill] sm:$0xff] %v2932_v60 }
  0xc5   : > { %631 = vrot.lane.b32.xlu1 %v570_v57, %s2507_s8  ;;  %629 = vrot.lane.b32.xlu0 %v569_v58, %s2507_s8  ;;  %v586_v57 = vmul.f32 %v2900_v40, %v2788_v45  ;;  %v585_v58 = vmul.f32 %v2900_v40, %v2791_v46 }
  0xc7   : > { %v2940_v63 = vpop.permute.xlu1 %299  ;;  %v2942_v5 = vpop.permute.xlu0 %297 }
  0xc8   : > { %4730 = vst [vmem:[#allocation20_spill] sm:$0xff] %v2940_v63  ;;  %4731 = vst [vmem:[#allocation21_spill] sm:$0xff] %v2942_v5 }
  0xc9   : > { %635 = vrot.lane.b32.xlu1 %v572_v61, %s2507_s8  ;;  %633 = vrot.lane.b32.xlu0 %v571_v62, %s2507_s8 }
  0xcb   : > { %v2950_v8 = vpop.permute.xlu1 %303  ;;  %v2952_v11 = vpop.permute.xlu0 %301 }
  0xcc   : > { %4732 = vst [vmem:[#allocation22_spill] sm:$0xff] %v2950_v8  ;;  %4733 = vst [vmem:[#allocation23_spill] sm:$0xff] %v2952_v11 }
  0xcd   : > { %639 = vrot.lane.b32.xlu1 %v574_v6, %s2507_s8  ;;  %637 = vrot.lane.b32.xlu0 %v573_v7, %s2507_s8  ;;  %v588_v6 = vmul.f32 %v2900_v40, %v2800_v49  ;;  %v587_v7 = vmul.f32 %v2900_v40, %v2803_v50 }
  0xcf   : > { %v2960_v16 = vpop.permute.xlu1 %307  ;;  %v2962_v19 = vpop.permute.xlu0 %305 }
  0xd0   : > { %4734 = vst [vmem:[#allocation24_spill] sm:$0xff] %v2960_v16  ;;  %4735 = vst [vmem:[#allocation25_spill] sm:$0xff] %v2962_v19 }
  0xd1   : > { %643 = vrot.lane.b32.xlu1 %v576_v12, %s2507_s8  ;;  %641 = vrot.lane.b32.xlu0 %v575_v15, %s2507_s8  ;;  %v3020_v12 = vstv %s2300_s19 }
  0xd2   : > { %4736 = vst [vmem:[#allocation26_spill] sm:$0xff] %v3020_v12  ;;  %v735_v53 = vmul.f32 %v3020_v12, %v2707_v18  ;;  %v741_v5 = vmul.f32 %v3020_v12, %v2743_v30  ;;  %v743_v59 = vmul.f32 %v3020_v12, %v2755_v34  ;;  %v749_v19 = vmul.f32 %v3020_v12, %v2791_v46 }
  0xd3   : > { %v2970_v24 = vpop.permute.xlu1 %311  ;;  %v2972_v27 = vpop.permute.xlu0 %309  ;;  %v753_v11 = vmul.f32 %v3020_v12, %v2814_v54 }
  0xd5   : > { %647 = vrot.lane.b32.xlu1 %v578_v20, %s2507_s8  ;;  %645 = vrot.lane.b32.xlu0 %v577_v23, %s2507_s8  ;;  %v727_v23 = vmul.f32 %v3020_v12, %v2659_v1 }
  0xd7   : > { %v2980_v32 = vpop.permute.xlu1 %315  ;;  %v2982_v35 = vpop.permute.xlu0 %313 }
  0xd9   : > { %651 = vrot.lane.b32.xlu1 %v580_v28, %s2507_s8  ;;  %649 = vrot.lane.b32.xlu0 %v579_v31, %s2507_s8  ;;  %v589_v28 = vmul.f32 %v2900_v40, %v2814_v54 }
  0xdb   : > { %v2990_v43 = vpop.permute.xlu1 %319  ;;  %v2992_v44 = vpop.permute.xlu0 %317 }
  0xdd   : > { %655 = vrot.lane.b32.xlu1 %v582_v36, %s2507_s8  ;;  %653 = vrot.lane.b32.xlu0 %v581_v39, %s2507_s8  ;;  %v729_v39 = vmul.f32 %v3020_v12, %v2656_v0 }
  0xdf   : > { %v3000_v51 = vpop.permute.xlu1 %323  ;;  %v3002_v52 = vpop.permute.xlu0 %321 }
  0xe1   : > { %659 = vrot.lane.b32.xlu1 %v584_v47, %s2507_s8  ;;  %657 = vrot.lane.b32.xlu0 %v583_v48, %s2507_s8  ;;  %v728_v47 = vmul.f32 %v3020_v12, %v2667_v4 }
  0xe3   : > { %v3010_v61 = vpop.permute.xlu1 %327  ;;  %v3012_v62 = vpop.permute.xlu0 %325 }
  0xe5   : > { %663 = vrot.lane.b32.xlu1 %v586_v57, %s2507_s8  ;;  %661 = vrot.lane.b32.xlu0 %v585_v58, %s2507_s8  ;;  %v731_v58 = vmul.f32 %v3020_v12, %v2683_v10 }
  0xe7   : > { %v3022_v15 = vpop.permute.xlu1 %331  ;;  %v3024_v20 = vpop.permute.xlu0 %329 }
  0xe8   : > { %4737 = vst [vmem:[#allocation27_spill] sm:$0xff] %v3022_v15 }
  0xe9   : > { %667 = vrot.lane.b32.xlu1 %v588_v6, %s2507_s8  ;;  %665 = vrot.lane.b32.xlu0 %v587_v7, %s2507_s8  ;;  %v730_v6 = vmul.f32 %v3020_v12, %v2664_v3 }
  0xeb   : > { %v3032_v31 = vpop.permute.xlu1 %335  ;;  %v3034_v36 = vpop.permute.xlu0 %333 }
  0xec   : > { %4738 = vst [vmem:[#allocation28_spill] sm:$0xff] %v3032_v31  ;;  %4739 = vst [vmem:[#allocation29_spill] sm:$0xff] %v3034_v36 }
  0xed   : > { %781 = vrot.lane.b32.xlu1 %v727_v23, %s2508_s26  ;;  %669 = vrot.lane.b32.xlu0 %v589_v28, %s2507_s8  ;;  %v733_v28 = vmul.f32 %v3020_v12, %v2695_v14  ;;  %s2437_s8 = scalar_lea.vmem %s2436_s7, 6144 }
  0xee   : > { %p2439_p10 = scmp.lt.s32.totalorder %s2437_s8, %s2431_s25 }
  0xef   : > { %v3042_v48 = vpop.permute.xlu1 %339  ;;  %v3044_v57 = vpop.permute.xlu0 %337 }
  0xf0   : > { %4740 = vst [vmem:[#allocation30_spill] sm:$0xff] %v3042_v48  ;;  %4741 = vst [vmem:[#allocation31_spill] sm:$0xff] %v3044_v57  ;;  %p2440_p2 = por %p2439_p10, %p2438_p9 }
  0xf1   : > { %785 = vrot.lane.b32.xlu1 %v729_v39, %s2508_s26  ;;  %783 = vrot.lane.b32.xlu0 %v728_v47, %s2508_s26  ;;  %v732_v39 = vmul.f32 %v3020_v12, %v2680_v9 }
  0xf2   : > { %p2441_p0 = pnand %p2440_p2, %p2434_p8 }
  0xf3   : > { %v3052_v7 = vpop.permute.xlu1 %453  ;;  %v3054_v23 = vpop.permute.xlu0 %341 }
  0xf4   : > { %4742 = vst [vmem:[#allocation32_spill] sm:$0xff] %v3052_v7  ;;  %4743 = vst [vmem:[#allocation33_spill] sm:$0xff] %v3054_v23  ;;  %v745_v7 = vmul.f32 %v3020_v12, %v2767_v38 }
  0xf5   : > { %789 = vrot.lane.b32.xlu1 %v731_v58, %s2508_s26  ;;  %787 = vrot.lane.b32.xlu0 %v730_v6, %s2508_s26  ;;  %v734_v58 = vmul.f32 %v3020_v12, %v2692_v13 }
  0xf7   : > { %v3062_v47 = vpop.permute.xlu1 %457  ;;  %v3064_v40 = vpop.permute.xlu0 %455 }
  0xf8   : > { %4744 = vst [vmem:[#allocation34_spill] sm:$0xff] %v3062_v47  ;;  %4745 = vst [vmem:[#allocation35_spill] sm:$0xff] %v3064_v40  ;;  %v737_v40 = vmul.f32 %v3020_v12, %v2719_v22 }
  0xf9   : > { %793 = vrot.lane.b32.xlu1 %v733_v28, %s2508_s26  ;;  %791 = vrot.lane.b32.xlu0 %v732_v39, %s2508_s26  ;;  %v736_v28 = vmul.f32 %v3020_v12, %v2704_v17 }
  0xfb   : > { %v3072_v6 = vpop.permute.xlu1 %461  ;;  %v3074_v2 = vpop.permute.xlu0 %459 }
  0xfc   : > { %4746 = vst [vmem:[#allocation36_spill] sm:$0xff] %v3072_v6  ;;  %4747 = vst [vmem:[#allocation37_spill] sm:$0xff] %v3074_v2  ;;  %v739_v6 = vmul.f32 %v3020_v12, %v2731_v26 }
  0xfd   : > { %797 = vrot.lane.b32.xlu1 %v735_v53, %s2508_s26  ;;  %795 = vrot.lane.b32.xlu0 %v734_v58, %s2508_s26  ;;  %v738_v53 = vmul.f32 %v3020_v12, %v2716_v21 }
  0xff   : > { %v3082_v39 = vpop.permute.xlu1 %465  ;;  %v3084_v47 = vpop.permute.xlu0 %463 }
 0x100   : > { %4748 = vst [vmem:[#allocation38_spill] sm:$0xff] %v3082_v39  ;;  %4749 = vst [vmem:[#allocation39_spill] sm:$0xff] %v3084_v47 }
 0x101   : > { %801 = vrot.lane.b32.xlu1 %v737_v40, %s2508_s26  ;;  %799 = vrot.lane.b32.xlu0 %v736_v28, %s2508_s26  ;;  %v740_v40 = vmul.f32 %v3020_v12, %v2728_v25 }
 0x103   : > { %v3092_v58 = vpop.permute.xlu1 %469  ;;  %v3094_v2 = vpop.permute.xlu0 %467 }
 0x104   : > { %4750 = vst [vmem:[#allocation40_spill] sm:$0xff] %v3092_v58  ;;  %4751 = vst [vmem:[#allocation41_spill] sm:$0xff] %v3094_v2 }
 0x105   : > { %805 = vrot.lane.b32.xlu1 %v739_v6, %s2508_s26  ;;  %803 = vrot.lane.b32.xlu0 %v738_v53, %s2508_s26  ;;  %v742_v6 = vmul.f32 %v3020_v12, %v2740_v29 }
 0x107   : > { %v3102_v28 = vpop.permute.xlu1 %473  ;;  %v3104_v60 = vpop.permute.xlu0 %471 }
 0x108   : > { %4752 = vst [vmem:[#allocation42_spill] sm:$0xff] %v3104_v60  ;;  %v747_v60 = vmul.f32 %v3020_v12, %v2779_v42 }
 0x109   : > { %809 = vrot.lane.b32.xlu1 %v741_v5, %s2508_s26  ;;  %807 = vrot.lane.b32.xlu0 %v740_v40, %s2508_s26  ;;  %v744_v5 = vmul.f32 %v3020_v12, %v2752_v33 }
 0x10b   : > { %v3112_v53 = vpop.permute.xlu1 %477  ;;  %v3114_v55 = vpop.permute.xlu0 %475 }
 0x10d   : > { %813 = vrot.lane.b32.xlu1 %v743_v59, %s2508_s26  ;;  %811 = vrot.lane.b32.xlu0 %v742_v6, %s2508_s26  ;;  %v746_v59 = vmul.f32 %v3020_v12, %v2764_v37 }
 0x10f   : > { %v3122_v40 = vpop.permute.xlu1 %481  ;;  %v3124_v56 = vpop.permute.xlu0 %479 }
 0x111   : > { %817 = vrot.lane.b32.xlu1 %v745_v7, %s2508_s26  ;;  %815 = vrot.lane.b32.xlu0 %v744_v5, %s2508_s26  ;;  %v748_v7 = vmul.f32 %v3020_v12, %v2776_v41 }
 0x113   : > { %v3132_v6 = vpop.permute.xlu1 %485  ;;  %v3134_v58 = vpop.permute.xlu0 %483 }
 0x115   : > { %821 = vrot.lane.b32.xlu1 %v747_v60, %s2508_s26  ;;  %819 = vrot.lane.b32.xlu0 %v746_v59, %s2508_s26  ;;  %v751_v60 = vmul.f32 %v3020_v12, %v2803_v50  ;;  %v750_v59 = vmul.f32 %v3020_v12, %v2788_v45 }
 0x117   : > { %v3142_v5 = vpop.permute.xlu1 %489  ;;  %v3144_v16 = vpop.permute.xlu0 %487 }
 0x119   : > { %825 = vrot.lane.b32.xlu1 %v749_v19, %s2508_s26  ;;  %823 = vrot.lane.b32.xlu0 %v748_v7, %s2508_s26  ;;  %v752_v19 = vmul.f32 %v3020_v12, %v2800_v49  ;;  %v3162_v7 = vstv %s2301_s27 }
 0x11a   : > { %4755 = vst [vmem:[#allocation45_spill] sm:$0xff] %v3162_v7  ;;  %v910_v57 = vmul.f32 %v3162_v7, %v2764_v37 }
 0x11b   : > { %v3152_v2 = vpop.permute.xlu1 %493  ;;  %v3154_v39 = vpop.permute.xlu0 %491 }
 0x11c   : > { %4753 = vst [vmem:[#allocation43_spill] sm:$0xff] %v3152_v2  ;;  %4754 = vst [vmem:[#allocation44_spill] sm:$0xff] %v3154_v39  ;;  %v916_v39 = vmul.f32 %v3162_v7, %v2800_v49 }
 0x11d   : > { %829 = vrot.lane.b32.xlu1 %v751_v60, %s2508_s26  ;;  %827 = vrot.lane.b32.xlu0 %v750_v59, %s2508_s26  ;;  %v892_v60 = vmul.f32 %v3162_v7, %v2667_v4  ;;  %v891_v59 = vmul.f32 %v3162_v7, %v2659_v1 }
 0x11f   : > { %v3164_v8 = vpop.permute.xlu1 %497  ;;  %v3166_v47 = vpop.permute.xlu0 %495 }
 0x120   : > { %4756 = vst [vmem:[#allocation46_spill] sm:$0xff] %v3164_v8  ;;  %4757 = vst [vmem:[#allocation47_spill] sm:$0xff] %v3166_v47  ;;  %v912_v47 = vmul.f32 %v3162_v7, %v2776_v41 }
 0x121   : > { %833 = vrot.lane.b32.xlu1 %v753_v11, %s2508_s26  ;;  %831 = vrot.lane.b32.xlu0 %v752_v19, %s2508_s26  ;;  %v894_v11 = vmul.f32 %v3162_v7, %v2664_v3  ;;  %v893_v19 = vmul.f32 %v3162_v7, %v2656_v0 }
 0x123   : > { %v3174_v63 = vpop.permute.xlu1 %501  ;;  %v3176_v23 = vpop.permute.xlu0 %499 }
 0x124   : > { %4758 = vst [vmem:[#allocation48_spill] sm:$0xff] %v3174_v63  ;;  %4759 = vst [vmem:[#allocation49_spill] sm:$0xff] %v3176_v23  ;;  %v896_v23 = vmul.f32 %v3162_v7, %v2680_v9 }
 0x125   : > { %947 = vrot.lane.b32.xlu1 %v892_v60, %s2509_s24  ;;  %945 = vrot.lane.b32.xlu0 %v891_v59, %s2509_s24  ;;  %v895_v60 = vmul.f32 %v3162_v7, %v2683_v10 }
 0x127   : > { %v3184_v12 = vpop.permute.xlu1 %505  ;;  %v3186_v48 = vpop.permute.xlu0 %503 }
 0x128   : > { %4760 = vst [vmem:[#allocation50_spill] sm:$0xff] %v3184_v12  ;;  %4761 = vst [vmem:[#allocation51_spill] sm:$0xff] %v3186_v48  ;;  %v898_v48 = vmul.f32 %v3162_v7, %v2692_v13 }
 0x129   : > { %951 = vrot.lane.b32.xlu1 %v894_v11, %s2509_s24  ;;  %949 = vrot.lane.b32.xlu0 %v893_v19, %s2509_s24  ;;  %v897_v11 = vmul.f32 %v3162_v7, %v2695_v14 }
 0x12b   : > { %v3194_v59 = vpop.permute.xlu1 %619  ;;  %v3196_v63 = vpop.permute.xlu0 %617 }
 0x12c   : > { %4762 = vst [vmem:[#allocation52_spill] sm:$0xff] %v3194_v59  ;;  %4763 = vst [vmem:[#allocation53_spill] sm:$0xff] %v3196_v63  ;;  %v900_v59 = vmul.f32 %v3162_v7, %v2704_v17 }
 0x12d   : > { %955 = vrot.lane.b32.xlu1 %v896_v23, %s2509_s24  ;;  %953 = vrot.lane.b32.xlu0 %v895_v60, %s2509_s24  ;;  %v899_v23 = vmul.f32 %v3162_v7, %v2707_v18 }
 0x12f   : > { %v3204_v19 = vpop.permute.xlu1 %623  ;;  %v3206_v12 = vpop.permute.xlu0 %621 }
 0x130   : > { %4764 = vst [vmem:[#allocation54_spill] sm:$0xff] %v3204_v19  ;;  %4765 = vst [vmem:[#allocation55_spill] sm:$0xff] %v3206_v12  ;;  %v902_v12 = vmul.f32 %v3162_v7, %v2716_v21 }
 0x131   : > { %959 = vrot.lane.b32.xlu1 %v898_v48, %s2509_s24  ;;  %957 = vrot.lane.b32.xlu0 %v897_v11, %s2509_s24  ;;  %v901_v48 = vmul.f32 %v3162_v7, %v2719_v22 }
 0x133   : > { %v3214_v60 = vpop.permute.xlu1 %627  ;;  %v3216_v63 = vpop.permute.xlu0 %625 }
 0x134   : > { %4766 = vst [vmem:[#allocation56_spill] sm:$0xff] %v3214_v60  ;;  %4767 = vst [vmem:[#allocation57_spill] sm:$0xff] %v3216_v63  ;;  %v904_v63 = vmul.f32 %v3162_v7, %v2728_v25 }
 0x135   : > { %963 = vrot.lane.b32.xlu1 %v900_v59, %s2509_s24  ;;  %961 = vrot.lane.b32.xlu0 %v899_v23, %s2509_s24  ;;  %v903_v59 = vmul.f32 %v3162_v7, %v2731_v26 }
 0x137   : > { %v3224_v11 = vpop.permute.xlu1 %631  ;;  %v3226_v19 = vpop.permute.xlu0 %629 }
 0x138   : > { %4768 = vst [vmem:[#allocation58_spill] sm:$0xff] %v3224_v11  ;;  %4769 = vst [vmem:[#allocation59_spill] sm:$0xff] %v3226_v19  ;;  %v906_v19 = vmul.f32 %v3162_v7, %v2740_v29 }
 0x139   : > { %967 = vrot.lane.b32.xlu1 %v902_v12, %s2509_s24  ;;  %965 = vrot.lane.b32.xlu0 %v901_v48, %s2509_s24  ;;  %v905_v12 = vmul.f32 %v3162_v7, %v2743_v30 }
 0x13b   : > { %v3234_v23 = vpop.permute.xlu1 %635  ;;  %v3236_v60 = vpop.permute.xlu0 %633 }
 0x13c   : > { %4770 = vst [vmem:[#allocation60_spill] sm:$0xff] %v3234_v23  ;;  %4771 = vst [vmem:[#allocation61_spill] sm:$0xff] %v3236_v60  ;;  %v908_v60 = vmul.f32 %v3162_v7, %v2752_v33 }
 0x13d   : > { %971 = vrot.lane.b32.xlu1 %v904_v63, %s2509_s24  ;;  %969 = vrot.lane.b32.xlu0 %v903_v59, %s2509_s24  ;;  %v907_v63 = vmul.f32 %v3162_v7, %v2755_v34 }
 0x13f   : > { %v3244_v48 = vpop.permute.xlu1 %639  ;;  %v3246_v11 = vpop.permute.xlu0 %637 }
 0x141   : > { %975 = vrot.lane.b32.xlu1 %v906_v19, %s2509_s24  ;;  %973 = vrot.lane.b32.xlu0 %v905_v12, %s2509_s24  ;;  %v909_v19 = vmul.f32 %v3162_v7, %v2767_v38 }
 0x143   : > { %v3254_v59 = vpop.permute.xlu1 %643  ;;  %v3256_v23 = vpop.permute.xlu0 %641 }
 0x145   : > { %979 = vrot.lane.b32.xlu1 %v908_v60, %s2509_s24  ;;  %977 = vrot.lane.b32.xlu0 %v907_v63, %s2509_s24  ;;  %v911_v60 = vmul.f32 %v3162_v7, %v2779_v42 }
 0x147   : > { %v3264_v12 = vpop.permute.xlu1 %647  ;;  %v3266_v31 = vpop.permute.xlu0 %645 }
 0x149   : > { %983 = vrot.lane.b32.xlu1 %v910_v57, %s2509_s24  ;;  %981 = vrot.lane.b32.xlu0 %v909_v19, %s2509_s24  ;;  %v914_v57 = vmul.f32 %v3162_v7, %v2788_v45  ;;  %v913_v19 = vmul.f32 %v3162_v7, %v2791_v46 }
 0x14b   : > { %v3274_v63 = vpop.permute.xlu1 %651  ;;  %v3276_v8 = vpop.permute.xlu0 %649 }
 0x14d   : > { %987 = vrot.lane.b32.xlu1 %v912_v47, %s2509_s24  ;;  %985 = vrot.lane.b32.xlu0 %v911_v60, %s2509_s24  ;;  %v915_v47 = vmul.f32 %v3162_v7, %v2803_v50  ;;  %v3294_v60 = vstv %s2302_s28 }
 0x14f   : > { %v3284_v36 = vpop.permute.xlu1 %655  ;;  %v3286_v15 = vpop.permute.xlu0 %653 }
 0x150   : > { %4772 = vst [vmem:[#allocation62_spill] sm:$0xff] %v3284_v36 }
 0x151   : > { %991 = vrot.lane.b32.xlu1 %v914_v57, %s2509_s24  ;;  %989 = vrot.lane.b32.xlu0 %v913_v19, %s2509_s24  ;;  %v1055_v57 = vmul.f32 %v3294_v60, %v2659_v1  ;;  %v917_v19 = vmul.f32 %v3162_v7, %v2814_v54  ;;  %v1059_v7 = vmul.f32 %v3294_v60, %v2683_v10 }
 0x153   : > { %v3296_v2 = vpop.permute.xlu1 %659  ;;  %v3298_v45 = vpop.permute.xlu0 %657 }
 0x154   : > { %4773 = vst [vmem:[#allocation63_spill] sm:$0xff] %v3296_v2 }
 0x155   : > { %995 = vrot.lane.b32.xlu1 %v916_v39, %s2509_s24  ;;  %993 = vrot.lane.b32.xlu0 %v915_v47, %s2509_s24  ;;  %v1057_v39 = vmul.f32 %v3294_v60, %v2656_v0  ;;  %v1056_v47 = vmul.f32 %v3294_v60, %v2667_v4  ;;  %v1061_v4 = vmul.f32 %v3294_v60, %v2695_v14 }
 0x157   : > { %v3306_v49 = vpop.permute.xlu1 %663  ;;  %v3308_v36 = vpop.permute.xlu0 %661 }
 0x159   : > { %1109 = vrot.lane.b32.xlu1 %v1055_v57, %s2510_s29  ;;  %997 = vrot.lane.b32.xlu0 %v917_v19, %s2509_s24  ;;  %v1058_v57 = vmul.f32 %v3294_v60, %v2664_v3  ;;  %v1063_v3 = vmul.f32 %v3294_v60, %v2707_v18 }
 0x15b   : > { %v3316_v2 = vpop.permute.xlu1 %667  ;;  %v3318_v1 = vpop.permute.xlu0 %665 }
 0x15d   : > { %1113 = vrot.lane.b32.xlu1 %v1057_v39, %s2510_s29  ;;  %1111 = vrot.lane.b32.xlu0 %v1056_v47, %s2510_s29  ;;  %v1060_v39 = vmul.f32 %v3294_v60, %v2680_v9  ;;  %v1065_v9 = vmul.f32 %v3294_v60, %v2719_v22 }
 0x15f   : > { %v3326_v19 = vpop.permute.xlu1 %781  ;;  %v3328_v0 = vpop.permute.xlu0 %669 }
 0x160   : > { %4774 = vst [vmem:[#allocation64_spill] sm:$0xff] %v3326_v19  ;;  %v3350_v19 = vstv %s204_s30 }
 0x161   : > { %1117 = vrot.lane.b32.xlu1 %v1059_v7, %s2510_s29  ;;  %1115 = vrot.lane.b32.xlu0 %v1058_v57, %s2510_s29  ;;  %v1062_v7 = vmul.f32 %v3294_v60, %v2692_v13  ;;  %v216_v18 = vmul.f32 %v3350_v19, %v2719_v22  ;;  %v218_v22 = vmul.f32 %v3350_v19, %v2731_v26 }
 0x163   : > { %v3336_v47 = vpop.permute.xlu1 %785  ;;  %v3338_v10 = vpop.permute.xlu0 %783 }
 0x164   : > { %4775 = vst [vmem:[#allocation65_spill] sm:$0xff] %v3336_v47  ;;  %4776 = vst [vmem:[#allocation66_spill] sm:$0xff] %v3338_v10 }
 0x165   : > { %1121 = vrot.lane.b32.xlu1 %v1061_v4, %s2510_s29  ;;  %1119 = vrot.lane.b32.xlu0 %v1060_v39, %s2510_s29  ;;  %v1064_v4 = vmul.f32 %v3294_v60, %v2704_v17  ;;  %v217_v17 = vmul.f32 %v3350_v19, %v2716_v21 }
 0x167   : > { %v3346_v57 = vpop.permute.xlu1 %789  ;;  %v3348_v14 = vpop.permute.xlu0 %787 }
 0x168   : > { %4777 = vst [vmem:[#allocation67_spill] sm:$0xff] %v3346_v57  ;;  %4778 = vst [vmem:[#allocation68_spill] sm:$0xff] %v3348_v14  ;;  %v380_v57 = vadd.f32 %v2972_v27, %v216_v18  ;;  %v1068_v27 = vmul.f32 %v3294_v60, %v2728_v25  ;;  %v382_v18 = vadd.f32 %v2982_v35, %v218_v22 }
 0x169   : > { %1125 = vrot.lane.b32.xlu1 %v1063_v3, %s2510_s29  ;;  %1123 = vrot.lane.b32.xlu0 %v1062_v7, %s2510_s29  ;;  %v1067_v3 = vmul.f32 %v3294_v60, %v2731_v26  ;;  %v1066_v7 = vmul.f32 %v3294_v60, %v2716_v21  ;;  %v1069_v21 = vmul.f32 %v3294_v60, %v2743_v30 }
 0x16a   : > { %v381_v26 = vadd.f32 %v2970_v24, %v217_v17  ;;  %v222_v24 = vmul.f32 %v3350_v19, %v2755_v34  ;;  %v1070_v35 = vmul.f32 %v3294_v60, %v2740_v29  ;;  %v223_v17 = vmul.f32 %v3350_v19, %v2752_v33 }
 0x16b   : > { %v3360_v13 = vpop.permute.xlu1 %793  ;;  %v3362_v39 = vpop.permute.xlu0 %791 }
 0x16d   : > { %1129 = vrot.lane.b32.xlu1 %v1065_v9, %s2510_s29  ;;  %1127 = vrot.lane.b32.xlu0 %v1064_v4, %s2510_s29  ;;  %v544_v9 = vadd.f32 %v3102_v28, %v380_v57  ;;  %v219_v4 = vmul.f32 %v3350_v19, %v2728_v25  ;;  %v220_v28 = vmul.f32 %v3350_v19, %v2743_v30 }
 0x16e   : > { %v1071_v30 = vmul.f32 %v3294_v60, %v2755_v34 }
 0x16f   : > { %v3375_v14 = vpop.permute.xlu1 %797  ;;  %v3377_v10 = vpop.permute.xlu0 %795  ;;  %v708_v57 = vadd.f32 %v3246_v11, %v544_v9  ;;  %v383_v11 = vadd.f32 %v2980_v32, %v219_v4  ;;  %v224_v32 = vmul.f32 %v3350_v19, %v2767_v38  ;;  %v225_v4 = vmul.f32 %v3350_v19, %v2764_v37 }
 0x170   : > { %4779 = vst [vmem:[#allocation69_spill] sm:$0xff] %v3375_v14  ;;  %4780 = vst [vmem:[#allocation70_spill] sm:$0xff] %v3377_v10  ;;  %v545_v10 = vadd.f32 %v3114_v55, %v381_v26 }
 0x171   : > { %1133 = vrot.lane.b32.xlu1 %v1067_v3, %s2510_s29  ;;  %1131 = vrot.lane.b32.xlu0 %v1066_v7, %s2510_s29  ;;  %v221_v3 = vmul.f32 %v3350_v19, %v2740_v29  ;;  %v546_v7 = vadd.f32 %v3112_v53, %v382_v18  ;;  %v384_v53 = vadd.f32 %v2992_v44, %v220_v28 }
 0x172   : > { %v709_v55 = vadd.f32 %v3244_v48, %v545_v10  ;;  %v547_v34 = vadd.f32 %v3124_v56, %v383_v11  ;;  %v1073_v44 = vmul.f32 %v3294_v60, %v2767_v38  ;;  %v386_v56 = vadd.f32 %v3002_v52, %v222_v24 }
 0x173   : > { %v802_v47 = vpop.permute.xlu1 %801  ;;  %v3393_v14 = vpop.permute.xlu0 %799  ;;  %v1075_v52 = vmul.f32 %v3294_v60, %v2779_v42 }
 0x174   : > { %v3399_v25 = vadd.f32 %v802_v47, %v708_v57  ;;  %v710_v47 = vadd.f32 %v3256_v23, %v546_v7  ;;  %v1072_v23 = vmul.f32 %v3294_v60, %v2752_v33  ;;  %v711_v48 = vadd.f32 %v3254_v59, %v547_v34  ;;  %v4783_v34 = vld [vmem:[#allocation44_spill] sm:$0xff] }
 0x175   : > { %1137 = vrot.lane.b32.xlu1 %v1069_v21, %s2510_s29  ;;  %1135 = vrot.lane.b32.xlu0 %v1068_v27, %s2510_s29  ;;  %v548_v21 = vadd.f32 %v3122_v40, %v384_v53  ;;  %v385_v40 = vadd.f32 %v2990_v43, %v221_v3  ;;  %v550_v28 = vadd.f32 %v3132_v6, %v386_v56  ;;  %v4786_v56 = vld [vmem:[#allocation62_spill] sm:$0xff] }
 0x176   : > { %v226_v43 = vmul.f32 %v3350_v19, %v2779_v42  ;;  %v387_v6 = vadd.f32 %v3000_v51, %v223_v17  ;;  %v227_v7 = vmul.f32 %v3350_v19, %v2776_v41  ;;  %v228_v51 = vmul.f32 %v3350_v19, %v2791_v46 }
 0x177   : > { %v806_v22 = vpop.permute.xlu1 %805  ;;  %v804_v9 = vpop.permute.xlu0 %803  ;;  %v712_v10 = vadd.f32 %v3266_v31, %v548_v21  ;;  %v549_v38 = vadd.f32 %v3134_v58, %v385_v40  ;;  %v1074_v31 = vmul.f32 %v3294_v60, %v2764_v37  ;;  %v388_v58 = vadd.f32 %v3012_v62, %v224_v32 }
 0x178   : > { %v3417_v27 = vadd.f32 %v806_v22, %v710_v47  ;;  %v3419_v29 = vadd.f32 %v804_v9, %v709_v55  ;;  %v714_v3 = vadd.f32 %v3276_v8, %v550_v28  ;;  %v551_v42 = vadd.f32 %v3144_v16, %v387_v6  ;;  %v4781_v55 = vld [vmem:[#allocation12_spill] sm:$0xff]  ;;  %v4782_v9 = vld [vmem:[#allocation43_spill] sm:$0xff] }
 0x179   : > { %1141 = vrot.lane.b32.xlu1 %v1071_v30, %s2510_s29  ;;  %1139 = vrot.lane.b32.xlu0 %v1070_v35, %s2510_s29  ;;  %v713_v59 = vadd.f32 %v3264_v12, %v549_v38  ;;  %v552_v35 = vadd.f32 %v3142_v5, %v388_v58  ;;  %v1077_v8 = vmul.f32 %v3294_v60, %v2791_v46  ;;  %v4788_v38 = vld [vmem:[#allocation46_spill] sm:$0xff] }
 0x17a   : > { %v1076_v62 = vmul.f32 %v3294_v60, %v2776_v41  ;;  %v389_v5 = vadd.f32 %v3010_v61, %v225_v4  ;;  %v390_v16 = vadd.f32 %v3024_v20, %v226_v43  ;;  %v715_v12 = vadd.f32 %v3274_v63, %v551_v42  ;;  %v4784_v63 = vld [vmem:[#allocation27_spill] sm:$0xff]  ;;  %v4787_v4 = vld [vmem:[#allocation13_spill] sm:$0xff] }
 0x17b   : > { %v810_v26 = vpop.permute.xlu1 %809  ;;  %v808_v18 = vpop.permute.xlu0 %807  ;;  %v716_v53 = vadd.f32 %v3286_v15, %v552_v35  ;;  %v229_v47 = vmul.f32 %v3350_v19, %v4781_v55  ;;  %v230_v61 = vmul.f32 %v3350_v19, %v2803_v50  ;;  %v1079_v15 = vmul.f32 %v3294_v60, %v2803_v50  ;;  %v4792_v35 = vld [vmem:[#allocation63_spill] sm:$0xff] }
 0x17c   : > { %v3437_v57 = vadd.f32 %v810_v26, %v712_v10  ;;  %v3439_v33 = vadd.f32 %v808_v18, %v711_v48  ;;  %v554_v21 = vadd.f32 %v4782_v9, %v390_v16  ;;  %v553_v46 = vadd.f32 %v4783_v34, %v389_v5  ;;  %v4793_v5 = vld [vmem:[#allocation48_spill] sm:$0xff] }
 0x17d   : > { %1145 = vrot.lane.b32.xlu1 %v1073_v44, %s2510_s29  ;;  %1143 = vrot.lane.b32.xlu0 %v1072_v23, %s2510_s29  ;;  %v1078_v20 = vmul.f32 %v3294_v60, %v4781_v55  ;;  %v391_v44 = vadd.f32 %v4784_v63, %v227_v7  ;;  %v4785_v23 = vld [vmem:[#allocation29_spill] sm:$0xff]  ;;  %v231_v26 = vmul.f32 %v3350_v19, %v4787_v4 }
 0x17e   : > { %v392_v40 = vadd.f32 %v4785_v23, %v228_v51  ;;  %v717_v48 = vadd.f32 %v4786_v56, %v553_v46  ;;  %v718_v10 = vadd.f32 %v3298_v45, %v554_v21  ;;  %v232_v58 = vmul.f32 %v3350_v19, %v2814_v54 }
 0x17f   : > { %v814_v24 = vpop.permute.xlu1 %813  ;;  %v812_v30 = vpop.permute.xlu0 %811  ;;  %v1081_v45 = vmul.f32 %v3294_v60, %v2814_v54 }
 0x180   : > { %v3457_v11 = vadd.f32 %v814_v24, %v714_v3  ;;  %v3459_v37 = vadd.f32 %v812_v30, %v713_v59  ;;  %v556_v43 = vadd.f32 %v4788_v38, %v392_v40  ;;  %v1080_v59 = vmul.f32 %v3294_v60, %v4787_v4  ;;  %v4790_v3 = vld [vmem:[#allocation28_spill] sm:$0xff]  ;;  %v4791_v24 = vld [vmem:[#allocation31_spill] sm:$0xff] }
 0x181   : > { %1149 = vrot.lane.b32.xlu1 %v1075_v52, %s2510_s29  ;;  %1147 = vrot.lane.b32.xlu0 %v1074_v31, %s2510_s29  ;;  %v4789_v52 = vld [vmem:[#allocation47_spill] sm:$0xff]  ;;  %v393_v7 = vadd.f32 %v4790_v3, %v229_v47  ;;  %v394_v30 = vadd.f32 %v4791_v24, %v230_v61  ;;  %v4795_v47 = vld [vmem:[#allocation30_spill] sm:$0xff]  ;;  %v4799_v38 = vld [vmem:[#allocation20_spill] sm:$0xff] }
 0x182   : > { %v555_v50 = vadd.f32 %v4789_v52, %v391_v44  ;;  %v720_v51 = vadd.f32 %v3308_v36, %v556_v43  ;;  %v4797_v61 = vld [vmem:[#allocation50_spill] sm:$0xff] }
 0x183   : > { %v818_v17 = vpop.permute.xlu1 %817  ;;  %v816_v22 = vpop.permute.xlu0 %815  ;;  %v558_v16 = vadd.f32 %v4793_v5, %v394_v30  ;;  %v4801_v30 = vld [vmem:[#allocation22_spill] sm:$0xff]  ;;  %v4803_v5 = vld [vmem:[#allocation56_spill] sm:$0xff] }
 0x184   : > { %v3477_v32 = vadd.f32 %v818_v17, %v716_v53  ;;  %v3479_v41 = vadd.f32 %v816_v22, %v715_v12  ;;  %v719_v42 = vadd.f32 %v4792_v35, %v555_v50  ;;  %v4794_v12 = vld [vmem:[#allocation49_spill] sm:$0xff]  ;;  %v395_v17 = vadd.f32 %v4795_v47, %v231_v26 }
 0x185   : > { %1153 = vrot.lane.b32.xlu1 %v1077_v8, %s2510_s29  ;;  %1151 = vrot.lane.b32.xlu0 %v1076_v62, %s2510_s29  ;;  %v557_v53 = vadd.f32 %v4794_v12, %v393_v7  ;;  %v4796_v22 = vld [vmem:[#allocation33_spill] sm:$0xff]  ;;  %v722_v21 = vadd.f32 %v3318_v1, %v558_v16  ;;  %v4804_v12 = vld [vmem:[#allocation38_spill] sm:$0xff] }
 0x186   : > { %v396_v9 = vadd.f32 %v4796_v22, %v232_v58  ;;  %v2382_v1 = vld [vmem:[%s2649_s17 + $0x28] sm:$0xff]  ;;  %v4800_v58 = vld [vmem:[#allocation39_spill] sm:$0xff] }
 0x187   : > { %v822_v18 = vpop.permute.xlu1 %821  ;;  %v820_v28 = vpop.permute.xlu0 %819  ;;  %v721_v36 = vadd.f32 %v3306_v49, %v557_v53  ;;  %v4805_v47 = vld [vmem:[#allocation41_spill] sm:$0xff] }
 0x188   : > { %v3497_v31 = vadd.f32 %v822_v18, %v718_v10  ;;  %v3499_v6 = vadd.f32 %v820_v28, %v717_v48  ;;  %v211_v10 = vmul.f32 %v2382_v1, %v3350_v19  ;;  %v4811_v1 = vld [vmem:[#allocation42_spill] sm:$0xff] }
 0x189   : > { %1157 = vrot.lane.b32.xlu1 %v1079_v15, %s2510_s29  ;;  %1155 = vrot.lane.b32.xlu0 %v1078_v20, %s2510_s29  ;;  %v560_v15 = vadd.f32 %v4797_v61, %v396_v9  ;;  %v4798_v20 = vld [vmem:[#allocation51_spill] sm:$0xff]  ;;  %v4806_v9 = vld [vmem:[#allocation24_spill] sm:$0xff] }
 0x18a   : > { %v559_v63 = vadd.f32 %v4798_v20, %v395_v17  ;;  %v375_v43 = vadd.f32 %v4799_v38, %v211_v10 }
 0x18b   : > { %v826_v8 = vpop.permute.xlu1 %825  ;;  %v824_v62 = vpop.permute.xlu0 %823  ;;  %v724_v56 = vadd.f32 %v3328_v0, %v560_v15  ;;  %v2384_v0 = vld [vmem:[%s2649_s17 + $0x30] sm:$0xff] }
 0x18c   : > { %v3515_v55 = vadd.f32 %v826_v8, %v720_v51  ;;  %v3517_v54 = vadd.f32 %v824_v62, %v719_v42  ;;  %v723_v40 = vadd.f32 %v3316_v2, %v559_v63  ;;  %v2383_v2 = vld [vmem:[%s2649_s17 + $0x38] sm:$0xff]  ;;  %v212_v50 = vmul.f32 %v2384_v0, %v3350_v19  ;;  %v2386_v8 = vld [vmem:[%s2649_s17 + $0x40] sm:$0x3f]  ;;  %v4808_v15 = vld [vmem:[#allocation58_spill] sm:$0xff] }
 0x18d   : > { %1161 = vrot.lane.b32.xlu1 %v1081_v45, %s2510_s29  ;;  %1159 = vrot.lane.b32.xlu0 %v1080_v59, %s2510_s29  ;;  %v213_v52 = vmul.f32 %v2383_v2, %v3350_v19  ;;  %v539_v45 = vadd.f32 %v4800_v58, %v375_v43  ;;  %v2385_v59 = vld [vmem:[%s2649_s17 + $0x48] sm:$0xff]  ;;  %v4802_v42 = vld [vmem:[#allocation23_spill] sm:$0xff]  ;;  %v214_v62 = vmul.f32 %v2386_v8, %v3350_v19  ;;  %v4813_v0 = vld [vmem:[#allocation60_spill] sm:$0xff] }
 0x18e   : > { %v215_v3 = vmul.f32 %v2385_v59, %v3350_v19  ;;  %v376_v51 = vadd.f32 %v4802_v42, %v212_v50  ;;  %v4809_v63 = vld [vmem:[#allocation59_spill] sm:$0xff]  ;;  %v4814_v58 = vld [vmem:[#allocation61_spill] sm:$0xff] }
 0x18f   : > { %v830_v34 = vpop.permute.xlu1 %829  ;;  %v828_v46 = vpop.permute.xlu0 %827  ;;  %v377_v35 = vadd.f32 %v4801_v30, %v213_v52  ;;  %v703_v16 = vadd.f32 %v4803_v5, %v539_v45  ;;  %v4815_v30 = vld [vmem:[#allocation69_spill] sm:$0xff] }
 0x190   : > { %v3527_v44 = vadd.f32 %v830_v34, %v722_v21  ;;  %v3529_v23 = vadd.f32 %v828_v46, %v721_v36  ;;  %v540_v53 = vadd.f32 %v4804_v12, %v376_v51  ;;  %v379_v36 = vadd.f32 %v4806_v9, %v215_v3  ;;  %v4807_v46 = vld [vmem:[#allocation25_spill] sm:$0xff] }
 0x191   : > { %v541_v17 = vadd.f32 %v4805_v47, %v377_v35  ;;  %v867_v22 = vadd.f32 %v3362_v39, %v703_v16  ;;  %v378_v61 = vadd.f32 %v4807_v46, %v214_v62  ;;  %v4812_v39 = vld [vmem:[#allocation70_spill] sm:$0xff] }
 0x192   : > { %v543_v10 = vadd.f32 %v4811_v1, %v379_v36 }
 0x193   : > { %v834_v49 = vpop.permute.xlu1 %833  ;;  %v832_v48 = vpop.permute.xlu0 %831  ;;  %v705_v20 = vadd.f32 %v4808_v15, %v541_v17 }
 0x194   : > { %v3535_v4 = vadd.f32 %v834_v49, %v724_v56  ;;  %v3537_v26 = vadd.f32 %v832_v48, %v723_v40  ;;  %v704_v40 = vadd.f32 %v4809_v63, %v540_v53  ;;  %v4810_v49 = vld [vmem:[#allocation40_spill] sm:$0xff]  ;;  %v707_v50 = vadd.f32 %v4813_v0, %v543_v10 }
 0x195   : > { %v542_v48 = vadd.f32 %v4810_v49, %v378_v61  ;;  %v869_v43 = vadd.f32 %v4812_v39, %v705_v20  ;;  %v2389_v10 = vld [vmem:[%s2649_s17 + $0x18] sm:$0xff]  ;;  %v4816_v39 = vld [vmem:[#allocation17_spill] sm:$0xff] }
 0x196   : > { %v868_v38 = vadd.f32 %v3360_v13, %v704_v40  ;;  %v871_v42 = vadd.f32 %v3393_v14, %v707_v50  ;;  %v4817_v50 = vld [vmem:[#allocation32_spill] sm:$0xff] }
 0x197   : > { %v3539_v18 = vpop.permute.xlu1 %947  ;;  %v3541_v28 = vpop.permute.xlu0 %945  ;;  %v706_v45 = vadd.f32 %v4814_v58, %v542_v48  ;;  %v2388_v48 = vld [vmem:[%s2649_s17 + $0x10] sm:$0xff] }
 0x198   : > { %v208_v1 = vmul.f32 %v2388_v48, %v3350_v19 }
 0x199   : > { %v870_v35 = vadd.f32 %v4815_v30, %v706_v45  ;;  %v4819_v30 = vld [vmem:[#allocation16_spill] sm:$0xff] }
 0x19b   : > { %v3551_v7 = vpop.permute.xlu1 %951  ;;  %v3553_v24 = vpop.permute.xlu0 %949 }
 0x19f   : > { %v956_v21 = vpop.permute.xlu1 %955  ;;  %v3564_v34 = vpop.permute.xlu0 %953 }
 0x1a0   : > { %v3569_v56 = vadd.f32 %v956_v21, %v867_v22 }
 0x1a3   : > { %v960_v2 = vpop.permute.xlu1 %959  ;;  %v958_v52 = vpop.permute.xlu0 %957 }
 0x1a4   : > { %v3577_v59 = vadd.f32 %v960_v2, %v869_v43  ;;  %v3579_v3 = vadd.f32 %v958_v52, %v868_v38  ;;  %v2390_v38 = vld [vmem:[%s2649_s17 + $0x8] sm:$0xff]  ;;  %v2391_v2 = vld [vmem:[%s2649_s17 + $0x20] sm:$0xff] }
 0x1a5   : > { %v210_v52 = vmul.f32 %v2391_v2, %v3350_v19 }
 0x1a7   : > { %v964_v51 = vpop.permute.xlu1 %963  ;;  %v962_v8 = vpop.permute.xlu0 %961 }
 0x1a8   : > { %v3583_v62 = vadd.f32 %v964_v51, %v871_v42  ;;  %v3585_v13 = vadd.f32 %v962_v8, %v870_v35  ;;  %v372_v35 = vadd.f32 %v4819_v30, %v208_v1  ;;  %v4820_v42 = vld [vmem:[#allocation18_spill] sm:$0xff]  ;;  %v4821_v8 = vld [vmem:[#allocation19_spill] sm:$0xff] }
 0x1a9   : > { %v4835_v30 = vld [vmem:[#allocation66_spill] sm:$0xff] }
 0x1ab   : > { %v968_v5 = vpop.permute.xlu1 %967  ;;  %v966_v16 = vpop.permute.xlu0 %965 }
 0x1ac   : > { %v3588_v12 = vadd.f32 %v968_v5, %v3419_v29  ;;  %v3591_v53 = vadd.f32 %v966_v16, %v3399_v25  ;;  %v4822_v16 = vld [vmem:[#allocation21_spill] sm:$0xff] }
 0x1af   : > { %v972_v47 = vpop.permute.xlu1 %971  ;;  %v970_v17 = vpop.permute.xlu0 %969 }
 0x1b0   : > { %v3594_v22 = vadd.f32 %v972_v47, %v3439_v33  ;;  %v3597_v14 = vadd.f32 %v970_v17, %v3417_v27  ;;  %v374_v47 = vadd.f32 %v4822_v16, %v210_v52  ;;  %v4823_v17 = vld [vmem:[#allocation53_spill] sm:$0xff] }
 0x1b1   : > { %v4833_v52 = vld [vmem:[#allocation57_spill] sm:$0xff] }
 0x1b3   : > { %v976_v9 = vpop.permute.xlu1 %975  ;;  %v974_v36 = vpop.permute.xlu0 %973 }
 0x1b4   : > { %v3600_v21 = vadd.f32 %v976_v9, %v3459_v37  ;;  %v3603_v29 = vadd.f32 %v974_v36, %v3437_v57  ;;  %v2387_v57 = vld [vmem:[%s2649_s17] sm:$0xff]  ;;  %v4824_v36 = vld [vmem:[#allocation34_spill] sm:$0xff] }
 0x1b5   : > { %v206_v63 = vmul.f32 %v2387_v57, %v3350_v19 }
 0x1b7   : > { %v980_v25 = vpop.permute.xlu1 %979  ;;  %v978_v46 = vpop.permute.xlu0 %977  ;;  %v370_v43 = vadd.f32 %v4816_v39, %v206_v63 }
 0x1b8   : > { %v3606_v61 = vadd.f32 %v980_v25, %v3479_v41  ;;  %v3609_v33 = vadd.f32 %v978_v46, %v3457_v11  ;;  %v536_v25 = vadd.f32 %v4824_v36, %v372_v35  ;;  %v4825_v46 = vld [vmem:[#allocation35_spill] sm:$0xff] }
 0x1b9   : > { %v534_v58 = vadd.f32 %v4817_v50, %v370_v43  ;;  %v4832_v43 = vld [vmem:[#allocation55_spill] sm:$0xff]  ;;  %v4834_v50 = vld [vmem:[#allocation65_spill] sm:$0xff] }
 0x1ba   : > { %v700_v2 = vadd.f32 %v4832_v43, %v536_v25  ;;  %v4839_v25 = vld [vmem:[#allocation11_spill] sm:$0xff] }
 0x1bb   : > { %v984_v27 = vpop.permute.xlu1 %983  ;;  %v982_v15 = vpop.permute.xlu0 %981  ;;  %v698_v9 = vadd.f32 %v4823_v17, %v534_v58 }
 0x1bc   : > { %v3612_v37 = vadd.f32 %v984_v27, %v3499_v6  ;;  %v3615_v20 = vadd.f32 %v982_v15, %v3477_v32  ;;  %v209_v6 = vmul.f32 %v2389_v10, %v3350_v19  ;;  %v207_v32 = vmul.f32 %v2390_v38, %v3350_v19  ;;  %v4826_v15 = vld [vmem:[#allocation37_spill] sm:$0xff] }
 0x1bd   : > { %v864_v58 = vadd.f32 %v4834_v50, %v700_v2 }
 0x1be   : > { %v373_v51 = vadd.f32 %v4820_v42, %v209_v6  ;;  %v371_v5 = vadd.f32 %v4821_v8, %v207_v32  ;;  %v4830_v6 = vld [vmem:[#allocation52_spill] sm:$0xff]  ;;  %v4831_v32 = vld [vmem:[#allocation54_spill] sm:$0xff] }
 0x1bf   : > { %v988_v40 = vpop.permute.xlu1 %987  ;;  %v986_v49 = vpop.permute.xlu0 %985  ;;  %v4836_v42 = vld [vmem:[#allocation68_spill] sm:$0xff] }
 0x1c0   : > { %v3620_v41 = vadd.f32 %v988_v40, %v3517_v54  ;;  %v3623_v11 = vadd.f32 %v986_v49, %v3497_v31  ;;  %v535_v27 = vadd.f32 %v4825_v46, %v371_v5  ;;  %v4828_v49 = vld [vmem:[#allocation64_spill] sm:$0xff] }
 0x1c1   : > { %v862_v48 = vadd.f32 %v4828_v49, %v698_v9 }
 0x1c2   : > { %v699_v38 = vadd.f32 %v4830_v6, %v535_v27  ;;  %v4840_v27 = vld [vmem:[#allocation14_spill] sm:$0xff] }
 0x1c3   : > { %v992_v0 = vpop.permute.xlu1 %991  ;;  %v990_v54 = vpop.permute.xlu0 %989 }
 0x1c4   : > { %v3636_v31 = vadd.f32 %v992_v0, %v3529_v23  ;;  %v3639_v45 = vadd.f32 %v990_v54, %v3515_v55  ;;  %v537_v23 = vadd.f32 %v4826_v15, %v373_v51  ;;  %v4827_v55 = vld [vmem:[#allocation36_spill] sm:$0xff]  ;;  %v1026_v54 = vadd.f32 %v3541_v28, %v862_v48 }
 0x1c5   : > { %v538_v40 = vadd.f32 %v4827_v55, %v374_v47  ;;  %v863_v35 = vadd.f32 %v4835_v30, %v699_v38  ;;  %v1028_v28 = vadd.f32 %v3553_v24, %v864_v58 }
 0x1c6   : > { %4818 = vst [vmem:[#allocation12_spill] sm:$0xff] %v3636_v31  ;;  %v701_v39 = vadd.f32 %v4831_v32, %v537_v23  ;;  %v4841_v23 = vld [vmem:[#allocation15_spill] sm:$0xff] }
 0x1c7   : > { %v996_v57 = vpop.permute.xlu1 %995  ;;  %v994_v63 = vpop.permute.xlu0 %993  ;;  %v702_v0 = vadd.f32 %v4833_v52, %v538_v40  ;;  %v1027_v17 = vadd.f32 %v3539_v18, %v863_v35  ;;  %v4843_v40 = vld [vmem:[#allocation45_spill] sm:$0xff] }
 0x1c8   : > { %v3652_v1 = vadd.f32 %v996_v57, %v3537_v26  ;;  %v3655_v10 = vadd.f32 %v994_v63, %v3527_v44  ;;  %v865_v26 = vadd.f32 %v4836_v42, %v701_v39  ;;  %v4837_v44 = vld [vmem:[#allocation67_spill] sm:$0xff] }
 0x1c9   : > { %v866_v5 = vadd.f32 %v4837_v44, %v702_v0 }
 0x1ca   : > { %4829 = vst [vmem:[#allocation43_spill] sm:$0xff] %v3652_v1  ;;  %v1029_v9 = vadd.f32 %v3551_v7, %v865_v26 }
 0x1cb   : > { %v1110_v51 = vpop.permute.xlu1 %1109  ;;  %v998_v8 = vpop.permute.xlu0 %997  ;;  %v1030_v36 = vadd.f32 %v3564_v34, %v866_v5 }
 0x1cc   : > { %v1190_v16 = vadd.f32 %v1110_v51, %v1026_v54  ;;  %v3667_v47 = vadd.f32 %v998_v8, %v3535_v4  ;;  %v4842_v4 = vld [vmem:[#allocation26_spill] sm:$0xff] }
 0x1ce   : > { %4838 = vst [vmem:[#allocation44_spill] sm:$0xff] %v3667_v47  ;;  %v1241_v46 = vmul.f32 %v1190_v16, %v4839_v25  ;;  %v1395_v15 = vmul.f32 %v1190_v16, %v4840_v27  ;;  %v1549_v57 = vmul.f32 %v1190_v16, %v4841_v23  ;;  %v1217_v63 = vmul.f32 %v1190_v16, %v3350_v19 }
 0x1cf   : > { %v1703_v55 = vmul.f32 %v1190_v16, %v4842_v4  ;;  %v3679_v18 = vmul.f32 %v1190_v16, %v4843_v40  ;;  %v3682_v7 = vmul.f32 %v1190_v16, %v3294_v60  ;;  %v1114_v24 = vpop.permute.xlu1 %1113  ;;  %v1112_v34 = vpop.permute.xlu0 %1111 }
 0x1d0   : > { %v1296_v49 = vrot.slane %v1241_v46, 1  ;;  %v1450_v48 = vrot.slane %v1395_v15, 2  ;;  %v1604_v6 = vrot.slane %v1549_v57, 3  ;;  %v1192_v38 = vadd.f32 %v1114_v24, %v1028_v28 }
 0x1d1   : > { %v1758_v32 = vrot.slane %v1703_v55, 4  ;;  %v1912_v39 = vrot.slane %v3679_v18, 5  ;;  %v2066_v43 = vrot.slane %v3682_v7, 6  ;;  %v1191_v2 = vadd.f32 %v1112_v34, %v1027_v17 }
 0x1d2   : > { %v3687_v52 = vmul.f32 %v1192_v38, %v3350_v19  ;;  %v3690_v0 = vmul.f32 %v1192_v38, %v4839_v25  ;;  %v3693_v54 = vmul.f32 %v1192_v38, %v4840_v27  ;;  %v3696_v50 = vmul.f32 %v1192_v38, %v4841_v23 }
 0x1d3   : > { %v3699_v58 = vmul.f32 %v1192_v38, %v4842_v4  ;;  %v3702_v30 = vmul.f32 %v1192_v38, %v4843_v40  ;;  %v3705_v35 = vmul.f32 %v1192_v38, %v3294_v60  ;;  %v1218_v42 = vmul.f32 %v1191_v2, %v3350_v19  ;;  %v1118_v5 = vpop.permute.xlu1 %1117  ;;  %v1116_v16 = vpop.permute.xlu0 %1115 }
 0x1d4   : > { %v1299_v26 = vrot.slane %v3690_v0, 1  ;;  %v1242_v44 = vmul.f32 %v1191_v2, %v4839_v25  ;;  %v1396_v15 = vmul.f32 %v1191_v2, %v4840_v27  ;;  %v1550_v55 = vmul.f32 %v1191_v2, %v4841_v23 }
 0x1d5   : > { %v1704_v18 = vmul.f32 %v1191_v2, %v4842_v4  ;;  %v1858_v7 = vmul.f32 %v1191_v2, %v4843_v40  ;;  %v2012_v34 = vmul.f32 %v1191_v2, %v3294_v60  ;;  %v1194_v38 = vadd.f32 %v1118_v5, %v1030_v36 }
 0x1d6   : > { %v1297_v57 = vrot.slane %v1242_v44, 1  ;;  %v1451_v24 = vrot.slane %v1396_v15, 2  ;;  %v3720_v8 = vadd.f32 %v1116_v16, %v1029_v9  ;;  %v1605_v28 = vrot.slane %v1550_v55, 3 }
 0x1d7   : > { %v1759_v44 = vrot.slane %v1704_v18, 4  ;;  %v4844_v31 = vrot.slane %v3693_v54, 2  ;;  %v4845_v36 = vrot.slane %v3696_v50, 3  ;;  %v4846_v5 = vrot.slane %v3699_v58, 4 }
 0x1d8   : > { %v1298_v17 = vsel %vm1295_vm0, %v1296_v49, %v1297_v57  ;;  %v1300_v46 = vsel %vm1295_vm0, %v1297_v57, %v1299_v26  ;;  %v1452_v47 = vsel %vm1449_vm1, %v1450_v48, %v1451_v24  ;;  %v1606_v9 = vsel %vm1603_vm2, %v1604_v6, %v1605_v28 }
 0x1d9   : > { %v1371_v51 = vadd.f32 %v1298_v17, %v1217_v63  ;;  %v1372_v1 = vadd.f32 %v1300_v46, %v1218_v42  ;;  %v1454_v15 = vsel %vm1449_vm1, %v1451_v24, %v4844_v31  ;;  %v1608_v49 = vsel %vm1603_vm2, %v1605_v28, %v4845_v36  ;;  %v1122_v36 = vpop.permute.xlu1 %1121 }
 0x1da   : > { %v1760_v2 = vsel %vm1757_vm3, %v1758_v32, %v1759_v44  ;;  %v1762_v63 = vsel %vm1757_vm3, %v1759_v44, %v4846_v5  ;;  %v1913_v16 = vrot.slane %v1858_v7, 5  ;;  %v2067_v17 = vrot.slane %v2012_v34, 6 }
 0x1db   : > { %v1525_v42 = vadd.f32 %v1452_v47, %v1371_v51  ;;  %v1526_v48 = vadd.f32 %v1454_v15, %v1372_v1  ;;  %v3739_v31 = vmul.f32 %v1194_v38, %v3350_v19  ;;  %v3742_v6 = vmul.f32 %v1194_v38, %v4839_v25 }
 0x1dc   : > { %v3745_v46 = vmul.f32 %v1194_v38, %v4840_v27  ;;  %v3748_v28 = vmul.f32 %v1194_v38, %v4841_v23  ;;  %v1914_v55 = vsel %vm1911_vm4, %v1912_v39, %v1913_v16  ;;  %v4847_v1 = vrot.slane %v3702_v30, 5 }
 0x1dd   : > { %v1679_v32 = vadd.f32 %v1606_v9, %v1525_v42  ;;  %v1680_v57 = vadd.f32 %v1608_v49, %v1526_v48  ;;  %v2068_v51 = vsel %vm2065_vm5, %v2066_v43, %v2067_v17  ;;  %v4848_v18 = vrot.slane %v3705_v35, 6 }
 0x1de   : > { %v1916_v47 = vsel %vm1911_vm4, %v1913_v16, %v4847_v1  ;;  %v1303_v24 = vrot.slane %v3742_v6, 1  ;;  %v4705_v34 = vrot.slane %v3745_v46, 2  ;;  %v3763_v39 = vmul.f32 %v1194_v38, %v4842_v4 }
 0x1df   : > { %v2070_v7 = vsel %vm2065_vm5, %v2067_v17, %v4848_v18  ;;  %v1833_v44 = vadd.f32 %v1760_v2, %v1679_v32  ;;  %v1834_v15 = vadd.f32 %v1762_v63, %v1680_v57  ;;  %v3766_v49 = vmul.f32 %v1194_v38, %v4843_v40 }
 0x1e0   : > { %v3769_v43 = vmul.f32 %v1194_v38, %v3294_v60  ;;  %v1220_v5 = vmul.f32 %v3720_v8, %v3350_v19  ;;  %v1244_v42 = vmul.f32 %v3720_v8, %v4839_v25  ;;  %v1765_v48 = vrot.slane %v3763_v39, 4 }
 0x1e1   : > { %v1987_v2 = vadd.f32 %v1914_v55, %v1833_v44  ;;  %v1988_v63 = vadd.f32 %v1916_v47, %v1834_v15  ;;  %v1398_v16 = vmul.f32 %v3720_v8, %v4840_v27  ;;  %v1919_v17 = vrot.slane %v3766_v49, 5 }
 0x1e2   : > { %v4706_v32 = vrot.slane %v3769_v43, 6  ;;  %v1301_v57 = vrot.slane %v1244_v42, 1  ;;  %v1552_v38 = vmul.f32 %v3720_v8, %v4841_v23  ;;  %v1706_v55 = vmul.f32 %v3720_v8, %v4842_v4 }
 0x1e3   : > { %v2141_v1 = vadd.f32 %v2068_v51, %v1987_v2  ;;  %v2142_v18 = vadd.f32 %v2070_v7, %v1988_v63  ;;  %v1455_v9 = vrot.slane %v1398_v16, 2  ;;  %v1860_v42 = vmul.f32 %v3720_v8, %v4843_v40  ;;  %v1120_v63 = vpop.permute.xlu0 %1119  ;;  %v1126_v16 = vpop.permute.xlu1 %1125 }
 0x1e4   : > { %v1302_v47 = vsel %vm1295_vm0, %v1299_v26, %v1301_v57  ;;  %v1304_v44 = vsel %vm1295_vm0, %v1301_v57, %v1303_v24  ;;  %v1609_v15 = vrot.slane %v1552_v38, 3  ;;  %v4849_v26 = vrot.slane %v3693_v54, 2 }
 0x1e5   : > { %2166 = vst.msk [vmem:[%s3792_s5] sm:$0xff] %vm2165_vm6, %v2141_v1  ;;  %2167 = vst.msk [vmem:[%s3792_s5 + $0x8] sm:$0xff] %vm2165_vm6, %v2142_v18  ;;  %v1373_v0 = vadd.f32 %v1302_v47, %v3687_v52  ;;  %v1374_v51 = vadd.f32 %v1304_v44, %v1220_v5  ;;  %v1458_v2 = vsel %vm1449_vm1, %v1455_v9, %v4705_v34  ;;  %v4850_v57 = vrot.slane %v3696_v50, 3 }
 0x1e6   : > { %v1456_v7 = vsel %vm1449_vm1, %v4849_v26, %v1455_v9  ;;  %v4851_v1 = vrot.slane %v3748_v28, 3  ;;  %v1763_v52 = vrot.slane %v1706_v55, 4  ;;  %v1917_v5 = vrot.slane %v1860_v42, 5 }
 0x1e7   : > { %v1610_v38 = vsel %vm1603_vm2, %v4850_v57, %v1609_v15  ;;  %v1527_v47 = vadd.f32 %v1456_v7, %v1373_v0  ;;  %v1528_v54 = vadd.f32 %v1458_v2, %v1374_v51  ;;  %v2014_v44 = vmul.f32 %v3720_v8, %v3294_v60 }
 0x1e8   : > { %v1612_v18 = vsel %vm1603_vm2, %v1609_v15, %v4851_v1  ;;  %v1196_v26 = vadd.f32 %v1122_v36, %v3579_v3  ;;  %v4852_v9 = vrot.slane %v3699_v58, 4  ;;  %v1766_v50 = vsel %vm1757_vm3, %v1763_v52, %v1765_v48 }
 0x1e9   : > { %v4853_v57 = vrot.slane %v3702_v30, 5  ;;  %v1920_v15 = vsel %vm1911_vm4, %v1917_v5, %v1919_v17  ;;  %v1681_v42 = vadd.f32 %v1610_v38, %v1527_v47  ;;  %v1682_v8 = vadd.f32 %v1612_v18, %v1528_v54 }
 0x1ea   : > { %v1764_v34 = vsel %vm1757_vm3, %v4852_v9, %v1763_v52  ;;  %v2071_v0 = vrot.slane %v2014_v44, 6  ;;  %v3827_v3 = vmul.f32 %v1196_v26, %v3350_v19  ;;  %v3830_v58 = vmul.f32 %v1196_v26, %v4839_v25  ;;  %v1124_v52 = vpop.permute.xlu0 %1123 }
 0x1eb   : > { %v1918_v55 = vsel %vm1911_vm4, %v4853_v57, %v1917_v5  ;;  %v3833_v36 = vmul.f32 %v1196_v26, %v4840_v27  ;;  %v3836_v30 = vmul.f32 %v1196_v26, %v4841_v23  ;;  %v3839_v51 = vmul.f32 %v1196_v26, %v4842_v4  ;;  %v1130_v5 = vpop.permute.xlu1 %1129 }
 0x1ec   : > { %v1835_v7 = vadd.f32 %v1764_v34, %v1681_v42  ;;  %v1836_v2 = vadd.f32 %v1766_v50, %v1682_v8  ;;  %v4854_v38 = vrot.slane %v3705_v35, 6  ;;  %v2074_v18 = vsel %vm2065_vm5, %v2071_v0, %v4706_v32 }
 0x1ed   : > { %v1307_v47 = vrot.slane %v3830_v58, 1  ;;  %v1461_v54 = vrot.slane %v3833_v36, 2  ;;  %v1615_v44 = vrot.slane %v3836_v30, 3  ;;  %v1769_v9 = vrot.slane %v3839_v51, 4 }
 0x1ee   : > { %v2072_v1 = vsel %vm2065_vm5, %v4854_v38, %v2071_v0  ;;  %v1989_v34 = vadd.f32 %v1918_v55, %v1835_v7  ;;  %v1990_v50 = vadd.f32 %v1920_v15, %v1836_v2  ;;  %v3852_v35 = vmul.f32 %v1196_v26, %v4843_v40 }
 0x1ef   : > { %v3855_v57 = vmul.f32 %v1196_v26, %v3294_v60  ;;  %v1195_v42 = vadd.f32 %v1120_v63, %v3569_v56  ;;  %v1198_v8 = vadd.f32 %v1126_v16, %v3585_v13  ;;  %v3860_v0 = vadd.f32 %v1124_v52, %v3577_v59 }
 0x1f0   : > { %v3863_v38 = vadd.f32 %v1130_v5, %v3591_v53  ;;  %v2143_v55 = vadd.f32 %v2072_v1, %v1989_v34  ;;  %v2144_v7 = vadd.f32 %v2074_v18, %v1990_v50  ;;  %v4860_v51 = vrot.slane %v3852_v35, 5 }
 0x1f1   : > { %v1222_v32 = vmul.f32 %v1195_v42, %v3350_v19  ;;  %v1246_v26 = vmul.f32 %v1195_v42, %v4839_v25  ;;  %v1400_v56 = vmul.f32 %v1195_v42, %v4840_v27  ;;  %v1554_v13 = vmul.f32 %v1195_v42, %v4841_v23 }
 0x1f2   : > { %2168 = vst.msk [vmem:[%s3792_s5 + $0x10] sm:$0xff] %vm2165_vm6, %v2143_v55  ;;  %2169 = vst.msk [vmem:[%s3792_s5 + $0x18] sm:$0xff] %vm2165_vm6, %v2144_v7  ;;  %v1708_v59 = vmul.f32 %v1195_v42, %v4842_v4  ;;  %v1862_v53 = vmul.f32 %v1195_v42, %v4843_v40  ;;  %v2016_v63 = vmul.f32 %v1195_v42, %v3294_v60  ;;  %v4855_v42 = vrot.slane %v3745_v46, 2 }
 0x1f3   : > { %v1249_v16 = vmul.f32 %v1198_v8, %v4839_v25  ;;  %v1305_v1 = vrot.slane %v1246_v26, 1  ;;  %v1459_v18 = vrot.slane %v1400_v56, 2  ;;  %v1613_v52 = vrot.slane %v1554_v13, 3 }
 0x1f4   : > { %v1403_v5 = vmul.f32 %v1198_v8, %v4840_v27  ;;  %v1767_v34 = vrot.slane %v1708_v59, 4  ;;  %v1921_v50 = vrot.slane %v1862_v53, 5  ;;  %v2075_v2 = vrot.slane %v2016_v63, 6 }
 0x1f5   : > { %v1311_v15 = vrot.slane %v1249_v16, 1  ;;  %v1306_v55 = vsel %vm1295_vm0, %v1303_v24, %v1305_v1  ;;  %v1308_v7 = vsel %vm1295_vm0, %v1305_v1, %v1307_v47  ;;  %v1460_v26 = vsel %vm1449_vm1, %v4855_v42, %v1459_v18 }
 0x1f6   : > { %v1462_v56 = vsel %vm1449_vm1, %v1459_v18, %v1461_v54  ;;  %v1375_v13 = vadd.f32 %v1306_v55, %v3739_v31  ;;  %v1376_v59 = vadd.f32 %v1308_v7, %v1222_v32  ;;  %v4856_v53 = vrot.slane %v3748_v28, 3 }
 0x1f7   : > { %v1616_v24 = vsel %vm1603_vm2, %v1613_v52, %v1615_v44  ;;  %v1768_v46 = vsel %vm1757_vm3, %v1765_v48, %v1767_v34  ;;  %v1770_v63 = vsel %vm1757_vm3, %v1767_v34, %v1769_v9  ;;  %v1922_v31 = vsel %vm1911_vm4, %v1919_v17, %v1921_v50 }
 0x1f8   : > { %v1614_v6 = vsel %vm1603_vm2, %v4856_v53, %v1613_v52  ;;  %v4857_v28 = vrot.slane %v3852_v35, 5  ;;  %v1529_v16 = vadd.f32 %v1460_v26, %v1375_v13  ;;  %v1530_v1 = vadd.f32 %v1462_v56, %v1376_v59 }
 0x1f9   : > { %v4858_v18 = vrot.slane %v3769_v43, 6  ;;  %v4859_v48 = vrot.slane %v3855_v57, 6  ;;  %v1465_v55 = vrot.slane %v1403_v5, 2  ;;  %v1557_v34 = vmul.f32 %v1198_v8, %v4841_v23 }
 0x1fa   : > { %v1924_v32 = vsel %vm1911_vm4, %v1921_v50, %v4857_v28  ;;  %v1711_v49 = vmul.f32 %v1198_v8, %v4842_v4  ;;  %v1865_v17 = vmul.f32 %v1198_v8, %v4843_v40  ;;  %v1683_v7 = vadd.f32 %v1614_v6, %v1529_v16 }
 0x1fb   : > { %v2076_v39 = vsel %vm2065_vm5, %v4858_v18, %v2075_v2  ;;  %v2078_v52 = vsel %vm2065_vm5, %v2075_v2, %v4859_v48  ;;  %v1684_v42 = vadd.f32 %v1616_v24, %v1530_v1  ;;  %v2019_v50 = vmul.f32 %v1198_v8, %v3294_v60 }
 0x1fc   : > { %v1224_v43 = vmul.f32 %v3860_v0, %v3350_v19  ;;  %v1619_v26 = vrot.slane %v1557_v34, 3  ;;  %v1773_v56 = vrot.slane %v1711_v49, 4  ;;  %v1927_v13 = vrot.slane %v1865_v17, 5 }
 0x1fd   : > { %v1248_v2 = vmul.f32 %v3860_v0, %v4839_v25  ;;  %v1837_v5 = vadd.f32 %v1768_v46, %v1683_v7  ;;  %v1838_v59 = vadd.f32 %v1770_v63, %v1684_v42  ;;  %v2081_v53 = vrot.slane %v2019_v50, 6 }
 0x1fe   : > { %v1402_v28 = vmul.f32 %v3860_v0, %v4840_v27  ;;  %v1556_v6 = vmul.f32 %v3860_v0, %v4841_v23  ;;  %v1710_v8 = vmul.f32 %v3860_v0, %v4842_v4  ;;  %v1864_v24 = vmul.f32 %v3860_v0, %v4843_v40 }
 0x1ff   : > { %v1309_v18 = vrot.slane %v1248_v2, 1  ;;  %v1991_v16 = vadd.f32 %v1922_v31, %v1837_v5  ;;  %v1992_v1 = vadd.f32 %v1924_v32, %v1838_v59  ;;  %v2018_v63 = vmul.f32 %v3860_v0, %v3294_v60 }
 0x200   : > { %v1463_v46 = vrot.slane %v1402_v28, 2  ;;  %v1617_v49 = vrot.slane %v1556_v6, 3  ;;  %v1771_v17 = vrot.slane %v1710_v8, 4  ;;  %v3958_v30 = vmul.f32 %v3863_v38, %v4839_v25  ;;  %v1128_v28 = vpop.permute.xlu0 %1127 }
 0x201   : > { %v1310_v48 = vsel %vm1295_vm0, %v1307_v47, %v1309_v18  ;;  %v1312_v34 = vsel %vm1295_vm0, %v1309_v18, %v1311_v15  ;;  %v2145_v7 = vadd.f32 %v2076_v39, %v1991_v16  ;;  %v2146_v42 = vadd.f32 %v2078_v52, %v1992_v1  ;;  %v1134_v18 = vpop.permute.xlu1 %1133 }
 0x202   : > { %v1377_v50 = vadd.f32 %v1310_v48, %v3827_v3  ;;  %v1378_v31 = vadd.f32 %v1312_v34, %v1224_v43  ;;  %v1464_v32 = vsel %vm1449_vm1, %v1461_v54, %v1463_v46  ;;  %v1466_v2 = vsel %vm1449_vm1, %v1463_v46, %v1465_v55 }
 0x203   : > { %v1618_v58 = vsel %vm1603_vm2, %v1615_v44, %v1617_v49  ;;  %v1620_v47 = vsel %vm1603_vm2, %v1617_v49, %v1619_v26  ;;  %2170 = vst.msk [vmem:[%s3792_s5 + $0x20] sm:$0xff] %vm2165_vm6, %v2145_v7  ;;  %2171 = vst.msk [vmem:[%s3792_s5 + $0x28] sm:$0xff] %vm2165_vm6, %v2146_v42  ;;  %v1772_v3 = vsel %vm1757_vm3, %v1769_v9, %v1771_v17  ;;  %v1925_v54 = vrot.slane %v1864_v24, 5 }
 0x204   : > { %v1531_v0 = vadd.f32 %v1464_v32, %v1377_v50  ;;  %v1532_v15 = vadd.f32 %v1466_v2, %v1378_v31  ;;  %v1774_v36 = vsel %vm1757_vm3, %v1771_v17, %v1773_v56  ;;  %v2079_v39 = vrot.slane %v2018_v63, 6  ;;  %v1132_v2 = vpop.permute.xlu0 %1131 }
 0x205   : > { %v3962_v55 = vmul.f32 %v3863_v38, %v4840_v27  ;;  %v3966_v43 = vmul.f32 %v3863_v38, %v4841_v23  ;;  %v1926_v9 = vsel %vm1911_vm4, %v4860_v51, %v1925_v54  ;;  %v1928_v26 = vsel %vm1911_vm4, %v1925_v54, %v1927_v13 }
 0x206   : > { %v1685_v44 = vadd.f32 %v1618_v58, %v1531_v0  ;;  %v1686_v52 = vadd.f32 %v1620_v47, %v1532_v15  ;;  %v4861_v56 = vrot.slane %v3855_v57, 6  ;;  %v2082_v59 = vsel %vm2065_vm5, %v2079_v39, %v2081_v53 }
 0x207   : > { %v3978_v24 = vmul.f32 %v3863_v38, %v3350_v19  ;;  %v1314_v35 = vrot.slane %v3958_v30, 1  ;;  %v3983_v16 = vmul.f32 %v3863_v38, %v4842_v4  ;;  %v3987_v57 = vmul.f32 %v3863_v38, %v4843_v40 }
 0x208   : > { %v2080_v5 = vsel %vm2065_vm5, %v4861_v56, %v2079_v39  ;;  %v1839_v6 = vadd.f32 %v1772_v3, %v1685_v44  ;;  %v1840_v8 = vadd.f32 %v1774_v36, %v1686_v52  ;;  %v3991_v13 = vmul.f32 %v3863_v38, %v3294_v60 }
 0x209   : > { %v1199_v46 = vadd.f32 %v1128_v28, %v3583_v62  ;;  %v3995_v63 = vadd.f32 %v1134_v18, %v3597_v14  ;;  %v1468_v48 = vrot.slane %v3962_v55, 2  ;;  %v1622_v34 = vrot.slane %v3966_v43, 3 }
 0x20a   : > { %v1993_v53 = vadd.f32 %v1926_v9, %v1839_v6  ;;  %v1994_v1 = vadd.f32 %v1928_v26, %v1840_v8  ;;  %v1776_v49 = vrot.slane %v3983_v16, 4  ;;  %v1930_v17 = vrot.slane %v3987_v57, 5 }
 0x20b   : > { %v4707_v42 = vrot.slane %v3991_v13, 6  ;;  %v1250_v50 = vmul.f32 %v1199_v46, %v4839_v25  ;;  %v1404_v62 = vmul.f32 %v1199_v46, %v4840_v27  ;;  %v1558_v31 = vmul.f32 %v1199_v46, %v4841_v23 }
 0x20c   : > { %v2147_v7 = vadd.f32 %v2080_v5, %v1993_v53  ;;  %v2148_v38 = vadd.f32 %v2082_v59, %v1994_v1  ;;  %v1712_v14 = vmul.f32 %v1199_v46, %v4842_v4  ;;  %v1866_v32 = vmul.f32 %v1199_v46, %v4843_v40 }
 0x20d   : > { %v1225_v58 = vmul.f32 %v1199_v46, %v3350_v19  ;;  %v1313_v47 = vrot.slane %v1250_v50, 1  ;;  %v2020_v0 = vmul.f32 %v1199_v46, %v3294_v60  ;;  %v4015_v15 = vmul.f32 %v3995_v63, %v4839_v25 }
 0x20e   : > { %2172 = vst.msk [vmem:[%s3792_s5 + $0x30] sm:$0xff] %vm2165_vm6, %v2147_v7  ;;  %2173 = vst.msk [vmem:[%s3792_s5 + $0x38] sm:$0xff] %vm2165_vm6, %v2148_v38  ;;  %v1467_v3 = vrot.slane %v1404_v62, 2  ;;  %v1621_v36 = vrot.slane %v1558_v31, 3  ;;  %v1775_v54 = vrot.slane %v1712_v14, 4  ;;  %v1929_v39 = vrot.slane %v1866_v32, 5 }
 0x20f   : > { %v1315_v44 = vsel %vm1295_vm0, %v1313_v47, %v1314_v35  ;;  %v2083_v52 = vrot.slane %v2020_v0, 6  ;;  %v4022_v55 = vmul.f32 %v3995_v63, %v4840_v27  ;;  %v1201_v51 = vadd.f32 %v1132_v2, %v3588_v12  ;;  %v1138_v2 = vpop.permute.xlu1 %1137 }
 0x210   : > { %v1379_v9 = vadd.f32 %v1315_v44, %v1225_v58  ;;  %v1469_v26 = vsel %vm1449_vm1, %v1467_v3, %v1468_v48  ;;  %v1623_v56 = vsel %vm1603_vm2, %v1621_v36, %v1622_v34  ;;  %v1777_v5 = vsel %vm1757_vm3, %v1775_v54, %v1776_v49  ;;  %v1136_v54 = vpop.permute.xlu0 %1135 }
 0x211   : > { %v1931_v59 = vsel %vm1911_vm4, %v1929_v39, %v1930_v17  ;;  %v2085_v28 = vsel %vm2065_vm5, %v2083_v52, %v4707_v42  ;;  %v4708_v12 = vrot.slane %v4015_v15, 1  ;;  %v4041_v18 = vmul.f32 %v3995_v63, %v4841_v23 }
 0x212   : > { %v1533_v6 = vadd.f32 %v1469_v26, %v1379_v9  ;;  %v4045_v8 = vmul.f32 %v3995_v63, %v4842_v4  ;;  %v4049_v53 = vmul.f32 %v3995_v63, %v4843_v40  ;;  %v4053_v1 = vmul.f32 %v3995_v63, %v3294_v60 }
 0x213   : > { %v1472_v46 = vrot.slane %v4022_v55, 2  ;;  %v1626_v7 = vrot.slane %v4041_v18, 3  ;;  %v1252_v38 = vmul.f32 %v1201_v51, %v4839_v25  ;;  %v1406_v50 = vmul.f32 %v1201_v51, %v4840_v27 }
 0x214   : > { %v1687_v62 = vadd.f32 %v1623_v56, %v1533_v6  ;;  %v1780_v31 = vrot.slane %v4045_v8, 4  ;;  %v1934_v14 = vrot.slane %v4049_v53, 5  ;;  %v1227_v32 = vmul.f32 %v1201_v51, %v3350_v19 }
 0x215   : > { %v1316_v58 = vrot.slane %v1252_v38, 1  ;;  %v1470_v47 = vrot.slane %v1406_v50, 2  ;;  %v1560_v0 = vmul.f32 %v1201_v51, %v4841_v23  ;;  %v1714_v3 = vmul.f32 %v1201_v51, %v4842_v4 }
 0x216   : > { %v1841_v36 = vadd.f32 %v1777_v5, %v1687_v62  ;;  %v1868_v39 = vmul.f32 %v1201_v51, %v4843_v40  ;;  %v2022_v44 = vmul.f32 %v1201_v51, %v3294_v60  ;;  %v4862_v16 = vrot.slane %v3991_v13, 6 }
 0x217   : > { %v1317_v52 = vsel %vm1295_vm0, %v1314_v35, %v1316_v58  ;;  %v1319_v9 = vsel %vm1295_vm0, %v1316_v58, %v4708_v12  ;;  %v1471_v26 = vsel %vm1449_vm1, %v1468_v48, %v1470_v47  ;;  %v1473_v56 = vsel %vm1449_vm1, %v1470_v47, %v1472_v46  ;;  %v1142_v47 = vpop.permute.xlu1 %1141 }
 0x218   : > { %v1995_v5 = vadd.f32 %v1931_v59, %v1841_v36  ;;  %v1380_v6 = vadd.f32 %v1317_v52, %v3978_v24  ;;  %v1381_v38 = vadd.f32 %v1319_v9, %v1227_v32  ;;  %v1624_v51 = vrot.slane %v1560_v0, 3 }
 0x219   : > { %v1778_v50 = vrot.slane %v1714_v3, 4  ;;  %v1932_v30 = vrot.slane %v1868_v39, 5  ;;  %v2086_v62 = vrot.slane %v2022_v44, 6  ;;  %v1204_v35 = vadd.f32 %v1138_v2, %v3603_v29 }
 0x21a   : > { %v2149_v42 = vadd.f32 %v2085_v28, %v1995_v5  ;;  %v1534_v58 = vadd.f32 %v1471_v26, %v1380_v6  ;;  %v1535_v12 = vadd.f32 %v1473_v56, %v1381_v38  ;;  %v1625_v48 = vsel %vm1603_vm2, %v1622_v34, %v1624_v51  ;;  %v1140_v26 = vpop.permute.xlu0 %1139 }
 0x21b   : > { %v1627_v24 = vsel %vm1603_vm2, %v1624_v51, %v1626_v7  ;;  %v1779_v59 = vsel %vm1757_vm3, %v1776_v49, %v1778_v50  ;;  %v1781_v29 = vsel %vm1757_vm3, %v1778_v50, %v1780_v31  ;;  %v1933_v28 = vsel %vm1911_vm4, %v1930_v17, %v1932_v30  ;;  %v1146_v51 = vpop.permute.xlu1 %1145 }
 0x21c   : > { %2174 = vst.msk [vmem:[%s3792_s5 + $0x40] sm:$0xff] %vm2165_vm6, %v2149_v42  ;;  %v1688_v43 = vadd.f32 %v1625_v48, %v1534_v58  ;;  %v1689_v34 = vadd.f32 %v1627_v24, %v1535_v12  ;;  %v1935_v32 = vsel %vm1911_vm4, %v1932_v30, %v1934_v14  ;;  %v2087_v49 = vsel %vm2065_vm5, %v4862_v16, %v2086_v62 }
 0x21d   : > { %v4863_v2 = vrot.slane %v4053_v1, 6  ;;  %v4106_v57 = vmul.f32 %v1204_v35, %v4839_v25  ;;  %v4109_v17 = vmul.f32 %v1204_v35, %v4840_v27  ;;  %v4112_v42 = vmul.f32 %v1204_v35, %v4841_v23 }
 0x21e   : > { %v1842_v12 = vadd.f32 %v1779_v59, %v1688_v43  ;;  %v1843_v3 = vadd.f32 %v1781_v29, %v1689_v34  ;;  %v4115_v36 = vmul.f32 %v1204_v35, %v4842_v4  ;;  %v4118_v13 = vmul.f32 %v1204_v35, %v4843_v40 }
 0x21f   : > { %v2089_v0 = vsel %vm2065_vm5, %v2086_v62, %v4863_v2  ;;  %v1228_v39 = vmul.f32 %v3995_v63, %v3350_v19  ;;  %v4123_v44 = vmul.f32 %v1204_v35, %v3350_v19  ;;  %v1322_v52 = vrot.slane %v4106_v57, 1 }
 0x220   : > { %v4127_v9 = vmul.f32 %v1204_v35, %v3294_v60  ;;  %v1996_v56 = vadd.f32 %v1933_v28, %v1842_v12  ;;  %v1997_v5 = vadd.f32 %v1935_v32, %v1843_v3  ;;  %v1476_v6 = vrot.slane %v4109_v17, 2 }
 0x221   : > { %v1630_v38 = vrot.slane %v4112_v42, 3  ;;  %v1784_v63 = vrot.slane %v4115_v36, 4  ;;  %v1938_v50 = vrot.slane %v4118_v13, 5  ;;  %v1203_v30 = vadd.f32 %v1136_v54, %v3594_v22 }
 0x222   : > { %v4135_v62 = vadd.f32 %v1142_v47, %v3609_v33  ;;  %v2150_v35 = vadd.f32 %v2087_v49, %v1996_v56  ;;  %v2151_v58 = vadd.f32 %v2089_v0, %v1997_v5  ;;  %v2092_v48 = vrot.slane %v4127_v9, 6 }
 0x223   : > { %v1205_v24 = vadd.f32 %v1140_v26, %v3600_v21  ;;  %v1254_v59 = vmul.f32 %v1203_v30, %v4839_v25  ;;  %v1408_v29 = vmul.f32 %v1203_v30, %v4840_v27  ;;  %v1562_v28 = vmul.f32 %v1203_v30, %v4841_v23 }
 0x224   : > { %v4143_v43 = vadd.f32 %v1146_v51, %v3615_v20  ;;  %2175 = vst.msk [vmem:[%s3792_s5 + $0x48] sm:$0xff] %vm2165_vm6, %v2150_v35  ;;  %2176 = vst.msk [vmem:[%s3792_s5 + $0x50] sm:$0xff] %vm2165_vm6, %v2151_v58  ;;  %v1229_v22 = vmul.f32 %v1203_v30, %v3350_v19  ;;  %v1716_v33 = vmul.f32 %v1203_v30, %v4842_v4  ;;  %v4864_v12 = vrot.slane %v4015_v15, 1 }
 0x225   : > { %v1870_v54 = vmul.f32 %v1203_v30, %v4843_v40  ;;  %v2024_v21 = vmul.f32 %v1203_v30, %v3294_v60  ;;  %v1320_v47 = vrot.slane %v1254_v59, 1  ;;  %v1474_v34 = vrot.slane %v1408_v29, 2 }
 0x226   : > { %v1628_v32 = vrot.slane %v1562_v28, 3  ;;  %v4155_v16 = vmul.f32 %v4135_v62, %v4839_v25  ;;  %v1782_v20 = vrot.slane %v1716_v33, 4  ;;  %v4159_v0 = vmul.f32 %v4135_v62, %v4840_v27 }
 0x227   : > { %v1936_v49 = vrot.slane %v1870_v54, 5  ;;  %v2090_v2 = vrot.slane %v2024_v21, 6  ;;  %v1321_v3 = vsel %vm1295_vm0, %v4864_v12, %v1320_v47  ;;  %v1323_v26 = vsel %vm1295_vm0, %v1320_v47, %v1322_v52 }
 0x228   : > { %v1475_v56 = vsel %vm1449_vm1, %v1472_v46, %v1474_v34  ;;  %v1477_v5 = vsel %vm1449_vm1, %v1474_v34, %v1476_v6  ;;  %v1382_v51 = vadd.f32 %v1321_v3, %v1228_v39  ;;  %v1383_v30 = vadd.f32 %v1323_v26, %v1229_v22 }
 0x229   : > { %v1629_v15 = vsel %vm1603_vm2, %v1626_v7, %v1628_v32  ;;  %v1631_v35 = vsel %vm1603_vm2, %v1628_v32, %v1630_v38  ;;  %v1783_v55 = vsel %vm1757_vm3, %v1780_v31, %v1782_v20  ;;  %v1785_v46 = vsel %vm1757_vm3, %v1782_v20, %v1784_v63 }
 0x22a   : > { %v1937_v39 = vsel %vm1911_vm4, %v1934_v14, %v1936_v49  ;;  %v1939_v18 = vsel %vm1911_vm4, %v1936_v49, %v1938_v50  ;;  %v1536_v7 = vadd.f32 %v1475_v56, %v1382_v51  ;;  %v1537_v58 = vadd.f32 %v1477_v5, %v1383_v30 }
 0x22b   : > { %v4865_v59 = vrot.slane %v4053_v1, 6  ;;  %v2093_v31 = vsel %vm2065_vm5, %v2090_v2, %v2092_v48  ;;  %v1326_v29 = vrot.slane %v4155_v16, 1  ;;  %v1480_v53 = vrot.slane %v4159_v0, 2 }
 0x22c   : > { %v4201_v14 = vmul.f32 %v4135_v62, %v4841_v23  ;;  %v4205_v28 = vmul.f32 %v4135_v62, %v4842_v4  ;;  %v1690_v22 = vadd.f32 %v1629_v15, %v1536_v7  ;;  %v1691_v1 = vadd.f32 %v1631_v35, %v1537_v58 }
 0x22d   : > { %v2091_v8 = vsel %vm2065_vm5, %v4865_v59, %v2090_v2  ;;  %v4209_v33 = vmul.f32 %v4135_v62, %v4843_v40  ;;  %v4213_v54 = vmul.f32 %v4135_v62, %v3294_v60  ;;  %v1231_v34 = vmul.f32 %v1205_v24, %v3350_v19 }
 0x22e   : > { %v1634_v21 = vrot.slane %v4201_v14, 3  ;;  %v1788_v47 = vrot.slane %v4205_v28, 4  ;;  %v1256_v32 = vmul.f32 %v1205_v24, %v4839_v25  ;;  %v1844_v20 = vadd.f32 %v1783_v55, %v1690_v22 }
 0x22f   : > { %v1845_v49 = vadd.f32 %v1785_v46, %v1691_v1  ;;  %v1942_v2 = vrot.slane %v4209_v33, 5  ;;  %v2096_v12 = vrot.slane %v4213_v54, 6  ;;  %v1410_v26 = vmul.f32 %v1205_v24, %v4840_v27  ;;  %v1144_v1 = vpop.permute.xlu0 %1143 }
 0x230   : > { %v1324_v3 = vrot.slane %v1256_v32, 1  ;;  %v1564_v56 = vmul.f32 %v1205_v24, %v4841_v23  ;;  %v1718_v5 = vmul.f32 %v1205_v24, %v4842_v4  ;;  %v1998_v51 = vadd.f32 %v1937_v39, %v1844_v20 }
 0x231   : > { %v1999_v30 = vadd.f32 %v1939_v18, %v1845_v49  ;;  %v1872_v15 = vmul.f32 %v1205_v24, %v4843_v40  ;;  %v2026_v35 = vmul.f32 %v1205_v24, %v3294_v60  ;;  %v1478_v7 = vrot.slane %v1410_v26, 2 }
 0x232   : > { %v1325_v55 = vsel %vm1295_vm0, %v1322_v52, %v1324_v3  ;;  %v1327_v46 = vsel %vm1295_vm0, %v1324_v3, %v1326_v29  ;;  %v1632_v58 = vrot.slane %v1564_v56, 3  ;;  %v2152_v59 = vadd.f32 %v2091_v8, %v1998_v51 }
 0x233   : > { %v2153_v22 = vadd.f32 %v2093_v31, %v1999_v30  ;;  %v1384_v39 = vadd.f32 %v1325_v55, %v4123_v44  ;;  %v1385_v18 = vadd.f32 %v1327_v46, %v1231_v34  ;;  %v1479_v24 = vsel %vm1449_vm1, %v1476_v6, %v1478_v7 }
 0x234   : > { %v1481_v57 = vsel %vm1449_vm1, %v1478_v7, %v1480_v53  ;;  %v1633_v52 = vsel %vm1603_vm2, %v1630_v38, %v1632_v58  ;;  %v1635_v8 = vsel %vm1603_vm2, %v1632_v58, %v1634_v21  ;;  %2177 = vst.msk [vmem:[%s3792_s5 + $0x58] sm:$0xff] %vm2165_vm6, %v2152_v59  ;;  %v1786_v31 = vrot.slane %v1718_v5, 4 }
 0x235   : > { %2178 = vst.msk [vmem:[%s3792_s5 + $0x60] sm:$0xff] %vm2165_vm6, %v2153_v22  ;;  %v1538_v44 = vadd.f32 %v1479_v24, %v1384_v39  ;;  %v1539_v17 = vadd.f32 %v1481_v57, %v1385_v18  ;;  %v1940_v6 = vrot.slane %v1872_v15, 5  ;;  %v2094_v34 = vrot.slane %v2026_v35, 6  ;;  %v1150_v39 = vpop.permute.xlu1 %1149 }
 0x236   : > { %v4251_v32 = vmul.f32 %v4143_v43, %v4839_v25  ;;  %v4255_v42 = vmul.f32 %v4143_v43, %v4840_v27  ;;  %v1207_v38 = vadd.f32 %v1144_v1, %v3606_v61  ;;  %v1787_v3 = vsel %vm1757_vm3, %v1784_v63, %v1786_v31 }
 0x237   : > { %v1692_v20 = vadd.f32 %v1633_v52, %v1538_v44  ;;  %v1693_v49 = vadd.f32 %v1635_v8, %v1539_v17  ;;  %v1789_v26 = vsel %vm1757_vm3, %v1786_v31, %v1788_v47  ;;  %v1941_v56 = vsel %vm1911_vm4, %v1938_v50, %v1940_v6  ;;  %v1148_v31 = vpop.permute.xlu0 %1147 }
 0x238   : > { %v1943_v5 = vsel %vm1911_vm4, %v1940_v6, %v1942_v2  ;;  %v2095_v61 = vsel %vm2065_vm5, %v2092_v48, %v2094_v34  ;;  %v2097_v36 = vsel %vm2065_vm5, %v2094_v34, %v2096_v12  ;;  %v1232_v63 = vmul.f32 %v4135_v62, %v3350_v19 }
 0x239   : > { %v1846_v51 = vadd.f32 %v1787_v3, %v1692_v20  ;;  %v1847_v30 = vadd.f32 %v1789_v26, %v1693_v49  ;;  %v4280_v13 = vmul.f32 %v4143_v43, %v3350_v19  ;;  %v1330_v50 = vrot.slane %v4251_v32, 1 }
 0x23a   : > { %v4285_v9 = vmul.f32 %v4143_v43, %v4841_v23  ;;  %v4289_v48 = vmul.f32 %v4143_v43, %v4842_v4  ;;  %v4293_v15 = vmul.f32 %v4143_v43, %v4843_v40  ;;  %v1258_v55 = vmul.f32 %v1207_v38, %v4839_v25 }
 0x23b   : > { %v2000_v62 = vadd.f32 %v1941_v56, %v1846_v51  ;;  %v2001_v35 = vadd.f32 %v1943_v5, %v1847_v30  ;;  %v1412_v46 = vmul.f32 %v1207_v38, %v4840_v27  ;;  %v1484_v7 = vrot.slane %v4255_v42, 2  ;;  %v1154_v51 = vpop.permute.xlu1 %1153 }
 0x23c   : > { %v1638_v58 = vrot.slane %v4285_v9, 3  ;;  %v1792_v59 = vrot.slane %v4289_v48, 4  ;;  %v4302_v22 = vmul.f32 %v4143_v43, %v3294_v60  ;;  %v1328_v24 = vrot.slane %v1258_v55, 1 }
 0x23d   : > { %v2154_v18 = vadd.f32 %v2095_v61, %v2000_v62  ;;  %v2155_v1 = vadd.f32 %v2097_v36, %v2001_v35  ;;  %v1482_v57 = vrot.slane %v1412_v46, 2  ;;  %v1566_v52 = vmul.f32 %v1207_v38, %v4841_v23  ;;  %v1152_v46 = vpop.permute.xlu0 %1151 }
 0x23e   : > { %v1720_v8 = vmul.f32 %v1207_v38, %v4842_v4  ;;  %v1874_v44 = vmul.f32 %v1207_v38, %v4843_v40  ;;  %v2028_v17 = vmul.f32 %v1207_v38, %v3294_v60  ;;  %v1946_v43 = vrot.slane %v4293_v15, 5 }
 0x23f   : > { %2179 = vst.msk [vmem:[%s3792_s5 + $0x68] sm:$0xff] %vm2165_vm6, %v2154_v18  ;;  %2180 = vst.msk [vmem:[%s3792_s5 + $0x70] sm:$0xff] %vm2165_vm6, %v2155_v1  ;;  %v1329_v6 = vsel %vm1295_vm0, %v1326_v29, %v1328_v24  ;;  %v1483_v34 = vsel %vm1449_vm1, %v1480_v53, %v1482_v57  ;;  %v4320_v42 = vadd.f32 %v1150_v39, %v3623_v11  ;;  %v1636_v38 = vrot.slane %v1566_v52, 3 }
 0x240   : > { %v1386_v20 = vadd.f32 %v1329_v6, %v1232_v63  ;;  %v1790_v49 = vrot.slane %v1720_v8, 4  ;;  %v1944_v3 = vrot.slane %v1874_v44, 5  ;;  %v2098_v26 = vrot.slane %v2028_v17, 6 }
 0x241   : > { %v4324_v56 = vmul.f32 %v4320_v42, %v4839_v25  ;;  %v4328_v16 = vmul.f32 %v4320_v42, %v4840_v27  ;;  %v1209_v0 = vadd.f32 %v1148_v31, %v3612_v37  ;;  %v1637_v11 = vsel %vm1603_vm2, %v1634_v21, %v1636_v38 }
 0x242   : > { %v1540_v29 = vadd.f32 %v1483_v34, %v1386_v20  ;;  %v1791_v53 = vsel %vm1757_vm3, %v1788_v47, %v1790_v49  ;;  %v1945_v5 = vsel %vm1911_vm4, %v1942_v2, %v1944_v3  ;;  %v2100_v61 = vrot.slane %v4302_v22, 6 }
 0x243   : > { %v2099_v36 = vsel %vm2065_vm5, %v2096_v12, %v2098_v26  ;;  %v1333_v37 = vrot.slane %v4324_v56, 1  ;;  %v4347_v14 = vmul.f32 %v4320_v42, %v4841_v23  ;;  %v4351_v28 = vmul.f32 %v4320_v42, %v4842_v4 }
 0x244   : > { %v1694_v21 = vadd.f32 %v1637_v11, %v1540_v29  ;;  %v4355_v33 = vmul.f32 %v4320_v42, %v4843_v40  ;;  %v4359_v54 = vmul.f32 %v4320_v42, %v3294_v60  ;;  %v1487_v47 = vrot.slane %v4328_v16, 2 }
 0x245   : > { %v1641_v2 = vrot.slane %v4347_v14, 3  ;;  %v1260_v12 = vmul.f32 %v1209_v0, %v4839_v25  ;;  %v1414_v63 = vmul.f32 %v1209_v0, %v4840_v27  ;;  %v1795_v62 = vrot.slane %v4351_v28, 4 }
 0x246   : > { %v1848_v30 = vadd.f32 %v1791_v53, %v1694_v21  ;;  %v1949_v35 = vrot.slane %v4355_v33, 5  ;;  %v1234_v55 = vmul.f32 %v1209_v0, %v3350_v19  ;;  %v1568_v18 = vmul.f32 %v1209_v0, %v4841_v23  ;;  %v1156_v53 = vpop.permute.xlu0 %1155 }
 0x247   : > { %v1331_v22 = vrot.slane %v1260_v12, 1  ;;  %v1485_v39 = vrot.slane %v1414_v63, 2  ;;  %v1722_v1 = vmul.f32 %v1209_v0, %v4842_v4  ;;  %v2103_v57 = vrot.slane %v4359_v54, 6 }
 0x248   : > { %v2002_v24 = vadd.f32 %v1945_v5, %v1848_v30  ;;  %v1876_v52 = vmul.f32 %v1209_v0, %v4843_v40  ;;  %v2030_v8 = vmul.f32 %v1209_v0, %v3294_v60  ;;  %v1639_v49 = vrot.slane %v1568_v18, 3  ;;  %v1158_v0 = vpop.permute.xlu1 %1157 }
 0x249   : > { %v1332_v44 = vsel %vm1295_vm0, %v1330_v50, %v1331_v22  ;;  %v1334_v17 = vsel %vm1295_vm0, %v1331_v22, %v1333_v37  ;;  %v1486_v31 = vsel %vm1449_vm1, %v1484_v7, %v1485_v39  ;;  %v1488_v6 = vsel %vm1449_vm1, %v1485_v39, %v1487_v47 }
 0x24a   : > { %v2156_v34 = vadd.f32 %v2099_v36, %v2002_v24  ;;  %v1387_v20 = vadd.f32 %v1332_v44, %v4280_v13  ;;  %v1388_v38 = vadd.f32 %v1334_v17, %v1234_v55  ;;  %v1793_v3 = vrot.slane %v1722_v1, 4 }
 0x24b   : > { %v1947_v26 = vrot.slane %v1876_v52, 5  ;;  %v2101_v32 = vrot.slane %v2030_v8, 6  ;;  %v1212_v50 = vadd.f32 %v1154_v51, %v3639_v45  ;;  %v1640_v7 = vsel %vm1603_vm2, %v1638_v58, %v1639_v49 }
 0x24c   : > { %2181 = vst.msk [vmem:[%s3792_s5 + $0x78] sm:$0xff] %vm2165_vm6, %v2156_v34  ;;  %v1541_v29 = vadd.f32 %v1486_v31, %v1387_v20  ;;  %v1542_v11 = vadd.f32 %v1488_v6, %v1388_v38  ;;  %v1642_v13 = vsel %vm1603_vm2, %v1639_v49, %v1641_v2  ;;  %v1794_v5 = vsel %vm1757_vm3, %v1792_v59, %v1793_v3  ;;  %v1162_v24 = vpop.permute.xlu1 %1161  ;;  %v1160_v31 = vpop.permute.xlu0 %1159 }
 0x24d   : > { %v1796_v45 = vsel %vm1757_vm3, %v1793_v3, %v1795_v62  ;;  %v1948_v36 = vsel %vm1911_vm4, %v1946_v43, %v1947_v26  ;;  %v1950_v9 = vsel %vm1911_vm4, %v1947_v26, %v1949_v35  ;;  %v2102_v12 = vsel %vm2065_vm5, %v2100_v61, %v2101_v32  ;;  %v4866_v3 = vld [vmem:[#allocation12_spill] sm:$0xff] }
 0x24e   : > { %v1695_v58 = vadd.f32 %v1640_v7, %v1541_v29  ;;  %v1696_v21 = vadd.f32 %v1642_v13, %v1542_v11  ;;  %v2104_v48 = vsel %vm2065_vm5, %v2101_v32, %v2103_v57  ;;  %v4410_v59 = vmul.f32 %v1212_v50, %v4839_v25  ;;  %v4867_v32 = vld [vmem:[#allocation44_spill] sm:$0xff]  ;;  %v4868_v13 = vld [vmem:[#allocation43_spill] sm:$0xff] }
 0x24f   : > { %v4413_v63 = vmul.f32 %v1212_v50, %v4840_v27  ;;  %v4416_v15 = vmul.f32 %v1212_v50, %v4841_v23  ;;  %v4419_v43 = vmul.f32 %v1212_v50, %v4842_v4  ;;  %v4422_v61 = vmul.f32 %v1212_v50, %v4843_v40 }
 0x250   : > { %v1849_v51 = vadd.f32 %v1794_v5, %v1695_v58  ;;  %v1850_v30 = vadd.f32 %v1796_v45, %v1696_v21  ;;  %v4425_v55 = vmul.f32 %v1212_v50, %v3294_v60  ;;  %v1235_v22 = vmul.f32 %v4320_v42, %v3350_v19 }
 0x251   : > { %v4430_v39 = vmul.f32 %v1212_v50, %v3350_v19  ;;  %v1337_v18 = vrot.slane %v4410_v59, 1  ;;  %v1491_v1 = vrot.slane %v4413_v63, 2  ;;  %v1645_v44 = vrot.slane %v4416_v15, 3 }
 0x252   : > { %v2003_v52 = vadd.f32 %v1948_v36, %v1849_v51  ;;  %v2004_v8 = vadd.f32 %v1950_v9, %v1850_v30  ;;  %v1799_v17 = vrot.slane %v4419_v43, 4  ;;  %v1953_v6 = vrot.slane %v4422_v61, 5 }
 0x253   : > { %v2107_v42 = vrot.slane %v4425_v55, 6  ;;  %v1211_v34 = vadd.f32 %v1152_v46, %v3620_v41  ;;  %v4440_v20 = vadd.f32 %v1158_v0, %v3655_v10  ;;  %v1213_v26 = vadd.f32 %v1156_v53, %v4866_v3 }
 0x254   : > { %v2157_v38 = vadd.f32 %v2102_v12, %v2003_v52  ;;  %v2158_v49 = vadd.f32 %v2104_v48, %v2004_v8  ;;  %v4444_v50 = vadd.f32 %v1162_v24, %v4867_v32  ;;  %v4450_v5 = vadd.f32 %v1160_v31, %v4868_v13 }
 0x255   : > { %v1262_v29 = vmul.f32 %v1211_v34, %v4839_v25  ;;  %v1416_v11 = vmul.f32 %v1211_v34, %v4840_v27  ;;  %v1570_v7 = vmul.f32 %v1211_v34, %v4841_v23  ;;  %v1236_v41 = vmul.f32 %v1211_v34, %v3350_v19 }
 0x256   : > { %2182 = vst.msk [vmem:[%s3792_s5 + $0x80] sm:$0xff] %vm2165_vm6, %v2157_v38  ;;  %2183 = vst.msk [vmem:[%s3792_s5 + $0x88] sm:$0xff] %vm2165_vm6, %v2158_v49  ;;  %v1724_v10 = vmul.f32 %v1211_v34, %v4842_v4  ;;  %v1878_v46 = vmul.f32 %v1211_v34, %v4843_v40  ;;  %v2032_v0 = vmul.f32 %v1211_v34, %v3294_v60 }
 0x257   : > { %v1335_v53 = vrot.slane %v1262_v29, 1  ;;  %v1489_v45 = vrot.slane %v1416_v11, 2  ;;  %v1643_v36 = vrot.slane %v1570_v7, 3  ;;  %v4462_v9 = vmul.f32 %v4440_v20, %v4839_v25 }
 0x258   : > { %v1797_v58 = vrot.slane %v1724_v10, 4  ;;  %v1951_v21 = vrot.slane %v1878_v46, 5  ;;  %v2105_v12 = vrot.slane %v2032_v0, 6  ;;  %v4466_v48 = vmul.f32 %v4440_v20, %v4840_v27 }
 0x259   : > { %v1336_v51 = vsel %vm1295_vm0, %v1333_v37, %v1335_v53  ;;  %v1338_v30 = vsel %vm1295_vm0, %v1335_v53, %v1337_v18  ;;  %v1490_v24 = vsel %vm1449_vm1, %v1487_v47, %v1489_v45  ;;  %v1492_v52 = vsel %vm1449_vm1, %v1489_v45, %v1491_v1 }
 0x25a   : > { %v1389_v8 = vadd.f32 %v1336_v51, %v1235_v22  ;;  %v1390_v31 = vadd.f32 %v1338_v30, %v1236_v41  ;;  %v1644_v56 = vsel %vm1603_vm2, %v1641_v2, %v1643_v36  ;;  %v1646_v37 = vsel %vm1603_vm2, %v1643_v36, %v1645_v44 }
 0x25b   : > { %v1798_v16 = vsel %vm1757_vm3, %v1795_v62, %v1797_v58  ;;  %v1800_v47 = vsel %vm1757_vm3, %v1797_v58, %v1799_v17  ;;  %v1952_v22 = vsel %vm1911_vm4, %v1949_v35, %v1951_v21  ;;  %v1954_v14 = vsel %vm1911_vm4, %v1951_v21, %v1953_v6 }
 0x25c   : > { %v1543_v2 = vadd.f32 %v1490_v24, %v1389_v8  ;;  %v1544_v34 = vadd.f32 %v1492_v52, %v1390_v31  ;;  %v2106_v28 = vsel %vm2065_vm5, %v2103_v57, %v2105_v12  ;;  %v2108_v62 = vsel %vm2065_vm5, %v2105_v12, %v2107_v42 }
 0x25d   : > { %v1341_v38 = vrot.slane %v4462_v9, 1  ;;  %v1495_v33 = vrot.slane %v4466_v48, 2  ;;  %v4508_v35 = vmul.f32 %v4440_v20, %v4841_v23  ;;  %v4512_v49 = vmul.f32 %v4440_v20, %v4842_v4 }
 0x25e   : > { %v1697_v3 = vadd.f32 %v1644_v56, %v1543_v2  ;;  %v1698_v54 = vadd.f32 %v1646_v37, %v1544_v34  ;;  %v4516_v57 = vmul.f32 %v4440_v20, %v4843_v40  ;;  %v4520_v32 = vmul.f32 %v4440_v20, %v3294_v60 }
 0x25f   : > { %v1649_v29 = vrot.slane %v4508_v35, 3  ;;  %v1803_v11 = vrot.slane %v4512_v49, 4  ;;  %v1238_v7 = vmul.f32 %v1213_v26, %v3350_v19  ;;  %v1264_v13 = vmul.f32 %v1213_v26, %v4839_v25 }
 0x260   : > { %v1851_v41 = vadd.f32 %v1798_v16, %v1697_v3  ;;  %v1852_v10 = vadd.f32 %v1800_v47, %v1698_v54  ;;  %v1957_v46 = vrot.slane %v4516_v57, 5  ;;  %v2111_v0 = vrot.slane %v4520_v32, 6 }
 0x261   : > { %v1339_v53 = vrot.slane %v1264_v13, 1  ;;  %v1418_v45 = vmul.f32 %v1213_v26, %v4840_v27  ;;  %v1572_v36 = vmul.f32 %v1213_v26, %v4841_v23  ;;  %v1726_v58 = vmul.f32 %v1213_v26, %v4842_v4 }
 0x262   : > { %v2005_v21 = vadd.f32 %v1952_v22, %v1851_v41  ;;  %v2006_v12 = vadd.f32 %v1954_v14, %v1852_v10  ;;  %v1880_v51 = vmul.f32 %v1213_v26, %v4843_v40  ;;  %v2034_v30 = vmul.f32 %v1213_v26, %v3294_v60 }
 0x263   : > { %v1340_v24 = vsel %vm1295_vm0, %v1337_v18, %v1339_v53  ;;  %v1342_v52 = vsel %vm1295_vm0, %v1339_v53, %v1341_v38  ;;  %v1493_v8 = vrot.slane %v1418_v45, 2  ;;  %v1647_v31 = vrot.slane %v1572_v36, 3 }
 0x264   : > { %v2159_v56 = vadd.f32 %v2106_v28, %v2005_v21  ;;  %v2160_v37 = vadd.f32 %v2108_v62, %v2006_v12  ;;  %v1391_v16 = vadd.f32 %v1340_v24, %v4430_v39  ;;  %v1392_v47 = vadd.f32 %v1342_v52, %v1238_v7 }
 0x265   : > { %v1494_v22 = vsel %vm1449_vm1, %v1491_v1, %v1493_v8  ;;  %v1496_v59 = vsel %vm1449_vm1, %v1493_v8, %v1495_v33  ;;  %v1648_v18 = vsel %vm1603_vm2, %v1645_v44, %v1647_v31  ;;  %v1650_v26 = vsel %vm1603_vm2, %v1647_v31, %v1649_v29 }
 0x266   : > { %2184 = vst.msk [vmem:[%s3792_s5 + $0x90] sm:$0xff] %vm2165_vm6, %v2159_v56  ;;  %2185 = vst.msk [vmem:[%s3792_s5 + $0x98] sm:$0xff] %vm2165_vm6, %v2160_v37  ;;  %v1545_v39 = vadd.f32 %v1494_v22, %v1391_v16  ;;  %v1546_v63 = vadd.f32 %v1496_v59, %v1392_v47  ;;  %v1801_v14 = vrot.slane %v1726_v58, 4  ;;  %v1955_v1 = vrot.slane %v1880_v51, 5 }
 0x267   : > { %v2109_v2 = vrot.slane %v2034_v30, 6  ;;  %v1267_v34 = vmul.f32 %v4444_v50, %v4839_v25  ;;  %v1421_v15 = vmul.f32 %v4444_v50, %v4840_v27  ;;  %v1575_v44 = vmul.f32 %v4444_v50, %v4841_v23 }
 0x268   : > { %v1699_v28 = vadd.f32 %v1648_v18, %v1545_v39  ;;  %v1700_v62 = vadd.f32 %v1650_v26, %v1546_v63  ;;  %v1802_v3 = vsel %vm1757_vm3, %v1799_v17, %v1801_v14  ;;  %v1804_v54 = vsel %vm1757_vm3, %v1801_v14, %v1803_v11 }
 0x269   : > { %v1956_v7 = vsel %vm1911_vm4, %v1953_v6, %v1955_v1  ;;  %v1958_v13 = vsel %vm1911_vm4, %v1955_v1, %v1957_v46  ;;  %v2110_v41 = vsel %vm2065_vm5, %v2107_v42, %v2109_v2  ;;  %v2112_v43 = vsel %vm2065_vm5, %v2109_v2, %v2111_v0 }
 0x26a   : > { %v1239_v17 = vmul.f32 %v4440_v20, %v3350_v19  ;;  %v1853_v10 = vadd.f32 %v1802_v3, %v1699_v28  ;;  %v1854_v53 = vadd.f32 %v1804_v54, %v1700_v62  ;;  %v1345_v61 = vrot.slane %v1267_v34, 1 }
 0x26b   : > { %v1499_v45 = vrot.slane %v1421_v15, 2  ;;  %v1653_v6 = vrot.slane %v1575_v44, 3  ;;  %v1729_v36 = vmul.f32 %v4444_v50, %v4842_v4  ;;  %v1883_v55 = vmul.f32 %v4444_v50, %v4843_v40 }
 0x26c   : > { %v2007_v58 = vadd.f32 %v1956_v7, %v1853_v10  ;;  %v2008_v42 = vadd.f32 %v1958_v13, %v1854_v53  ;;  %v2037_v21 = vmul.f32 %v4444_v50, %v3294_v60  ;;  %v1266_v20 = vmul.f32 %v4450_v5, %v4839_v25 }
 0x26d   : > { %v1807_v12 = vrot.slane %v1729_v36, 4  ;;  %v1961_v51 = vrot.slane %v1883_v55, 5  ;;  %v1240_v30 = vmul.f32 %v4450_v5, %v3350_v19  ;;  %v1420_v24 = vmul.f32 %v4450_v5, %v4840_v27 }
 0x26e   : > { %v2161_v52 = vadd.f32 %v2110_v41, %v2007_v58  ;;  %v2162_v8 = vadd.f32 %v2112_v43, %v2008_v42  ;;  %v1343_v31 = vrot.slane %v1266_v20, 1  ;;  %v1574_v56 = vmul.f32 %v4450_v5, %v4841_v23 }
 0x26f   : > { %v1497_v37 = vrot.slane %v1420_v24, 2  ;;  %v1728_v50 = vmul.f32 %v4450_v5, %v4842_v4  ;;  %v1882_v25 = vmul.f32 %v4450_v5, %v4843_v40  ;;  %v2036_v16 = vmul.f32 %v4450_v5, %v3294_v60 }
 0x270   : > { %2186 = vst.msk [vmem:[%s3792_s5 + $0xa0] sm:$0xff] %vm2165_vm6, %v2161_v52  ;;  %2187 = vst.msk [vmem:[%s3792_s5 + $0xa8] sm:$0xff] %vm2165_vm6, %v2162_v8  ;;  %v2115_v19 = vrot.slane %v2037_v21, 6  ;;  %v1344_v27 = vsel %vm1295_vm0, %v1341_v38, %v1343_v31  ;;  %v1346_v23 = vsel %vm1295_vm0, %v1343_v31, %v1345_v61  ;;  %v1651_v47 = vrot.slane %v1574_v56, 3 }
 0x271   : > { %v1393_v22 = vadd.f32 %v1344_v27, %v1239_v17  ;;  %v1394_v4 = vadd.f32 %v1346_v23, %v1240_v30  ;;  %v1498_v40 = vsel %vm1449_vm1, %v1495_v33, %v1497_v37  ;;  %v1500_v60 = vsel %vm1449_vm1, %v1497_v37, %v1499_v45 }
 0x272   : > { %v1652_v5 = vsel %vm1603_vm2, %v1649_v29, %v1651_v47  ;;  %v1654_v9 = vsel %vm1603_vm2, %v1651_v47, %v1653_v6  ;;  %v1805_v59 = vrot.slane %v1728_v50, 4  ;;  %v1959_v38 = vrot.slane %v1882_v25, 5 }
 0x273   : > { %v1547_v18 = vadd.f32 %v1498_v40, %v1393_v22  ;;  %v1548_v26 = vadd.f32 %v1500_v60, %v1394_v4  ;;  %v2113_v39 = vrot.slane %v2036_v16, 6 }
 0x274   : > { %v1806_v48 = vsel %vm1757_vm3, %v1803_v11, %v1805_v59  ;;  %v1808_v33 = vsel %vm1757_vm3, %v1805_v59, %v1807_v12  ;;  %v1960_v35 = vsel %vm1911_vm4, %v1957_v46, %v1959_v38  ;;  %v1962_v29 = vsel %vm1911_vm4, %v1959_v38, %v1961_v51 }
 0x275   : > { %v1701_v63 = vadd.f32 %v1652_v5, %v1547_v18  ;;  %v1702_v14 = vadd.f32 %v1654_v9, %v1548_v26  ;;  %v2114_v1 = vsel %vm2065_vm5, %v2111_v0, %v2113_v39  ;;  %v2116_v49 = vsel %vm2065_vm5, %v2113_v39, %v2115_v19 }
 0x277   : > { %v1855_v11 = vadd.f32 %v1806_v48, %v1701_v63  ;;  %v1856_v2 = vadd.f32 %v1808_v33, %v1702_v14 }
 0x279   : > { %v2009_v57 = vadd.f32 %v1960_v35, %v1855_v11  ;;  %v2010_v46 = vadd.f32 %v1962_v29, %v1856_v2 }
 0x27b   : > { %v2163_v34 = vadd.f32 %v2114_v1, %v2009_v57  ;;  %v2164_v15 = vadd.f32 %v2116_v49, %v2010_v46 }
 0x27d   : > { %2188 = vst.msk [vmem:[%s3792_s5 + $0xb0] sm:$0xff] %vm2165_vm6, %v2163_v34  ;;  %2189 = vst.msk [vmem:[%s3792_s5 + $0xb8] sm:$0xff] %vm2165_vm6, %v2164_v15 }
 0x27e   : > { %2444 = shalt.err (!%p2441_p0)
}
 0x27f   : > { %s2445_s19 = scalar_lea.hbm %s4635_s20, 3072  ;;  %s2449_s24 = scalar_lea.hbm %s4686_s2, 6144 }
 0x280   : > { %p2446_p3 = scmp.ne.s32.totalorder %s4635_s20, %s2445_s19  ;;  %p2450_p1 = scmp.lt.s32.totalorder %s4635_s20, %s4686_s2 }
 0x281   : > { %p2451_p6 = scmp.lt.s32.totalorder %s2449_s24, %s2445_s19 }
 0x282   : > { %p2447_p5 = pnand %p2446_p3, %p4869_p13 }
 0x283   : > { %p2452_p11 = por %p2451_p6, %p2450_p1 }
 0x284   : > { %p2448_p4 = pneg %p2447_p5 }
 0x286   : > { %p2453_p12 = pnand %p2452_p11, %p2448_p4 }
 0x288   : > { %2456 = shalt.err (!%p2453_p12)
}
 0x289   : > { %s2512_s30 = smov 128   ;;  %s2513_s3 = smov 8  }
 0x28a   : > { %2320 = dma.vmem_to_hbm [thread:$0]  (%p4869_p13), %s4637_s16, 3072, %s4635_s20, %s2191_s13, %s2512_s30, %s2512_s30, %s2513_s3  }
 0x28b PF: > { %s2220_s5 = sand.u32 1, %s2487_s9   ;;  %p4870_p7 = scmp.ne.s32.totalorder %s4712_s22, 0 }
 0x28c   : > { %p4871_p8 = scmp.ge.s32.totalorder %s2499_s12, 2  ;;  %s2221_s14 = scalar_lea.sflag [#allocation4], %s2220_s5 }
 0x28e   : > { %p2331_p9 = pnand %p4871_p8, %p4870_p7 }
 0x290   : > { %p2332_p10 = pneg %p2331_p9 }
 0x292   : > { %2482 = dma.done.wait (%p2332_p10), %s2221_s14, 3072  }
 0x293   : > { %2484 = vsyncadd (%p2332_p10), %s2221_s14, 4294964224  ;;  %p16_p2 = scmp.ge.s32.totalorder %s2554_s15, 4   ;;  %s4872_s9 = smov %s2491_s10 }
 0x294   : > { %s4873_s10 = smov %s2495_s11  ;;  %s4874_s11 = smov %s2566_s18 }
 0x295   : > { %s4875_s12 = smov %s2554_s15  ;;  %18 = sbr.rel (!%p16_p2) target bundleno = 6 (0x6), region = 78 }
 0x29a   :  { %2226 = vsyncpa [#allocation3], 1 }
 0x29b   :  { %2228 = vsyncpa [#allocation3 + $0x1], 1 }
 0x29c   :  { %2229 = vsyncpa [#allocation4], 1 }
 0x29d   :  { %2231 = vsyncpa [#allocation4 + $0x1], 1 }
 0x29e   :  { %2232 = vsyncpa [#allocation5], 1 }
 0x29f   :  { %2234 = vsyncpa [#allocation5 + $0x1], 1 }

</bundles_post_ra>
